<compile_context>
chip_gen: v7x
topology: tpu7x:2x2x1
jax: 0.10.0
libtpu: 0.0.40
codegen_flags: <defaults>
</compile_context>

<pallas_src>
import functools

import jax
import jax.numpy as jnp
from jax.experimental import pallas as pl
from jax.experimental.pallas import tpu as pltpu

# "args" of the original repo, fixed deterministically in-script.
LATDIM = 8            # args.latdim
GNN_LAYER = 2         # args.gnn_layer
LN_EPS = 1e-5         # nn.LayerNorm default eps
LANE = 128            # TPU lane width

_MIB = 1024 * 1024
RHS_RESIDENT_BYTES = 8 * _MIB     # keep the full RHS slab in VMEM below this
FUSE_ADJ_BYTES = 8 * _MIB         # fuse all hops when bf16 adj fits this


def _round_up(x, m):
    return ((x + m - 1) // m) * m


def _pick_tile(dim, target, align):
    """Largest tile <= target that is align-aligned and divides dim, else dim."""
    t = min(target, dim)
    t = (t // align) * align
    while t >= align:
        if dim % t == 0:
            return t
        t -= align
    return dim


# ---------------------------------------------------------------------------
# Kernel 1: LayerNorm (no affine) over latdim, fused with zero-padding of the
# lane axis: input block (tm, d), output block (tm, dp) with lanes [d:] = 0.
# ---------------------------------------------------------------------------
def _layernorm_pad_kernel(x_ref, o_ref, *, d):
    x = x_ref[...]                                           # (tm, d) f32
    inv_d = 1.0 / d
    mean = jnp.sum(x, axis=-1, keepdims=True) * inv_d
    xc = x - mean
    var = jnp.sum(xc * xc, axis=-1, keepdims=True) * inv_d
    y = xc * jax.lax.rsqrt(var + LN_EPS)
    o_ref[...] = jnp.zeros_like(o_ref)                       # pad lanes -> 0
    o_ref[:, :d] = y.astype(o_ref.dtype)                     # lanes [0:d)


def layernorm_pad(x, dp, *, out_dtype=jnp.bfloat16, tile_rows=1024):
    n, d = x.shape
    tm = _pick_tile(n, min(tile_rows, max(16, n // 2)), 16)
    return pl.pallas_call(
        functools.partial(_layernorm_pad_kernel, d=d),
        out_shape=jax.ShapeDtypeStruct((n, dp), out_dtype),
        grid=(n // tm,),
        in_specs=[pl.BlockSpec((tm, d), lambda i: (i, 0))],
        out_specs=pl.BlockSpec((tm, dp), lambda i: (i, 0)),
        compiler_params=pltpu.CompilerParams(
            dimension_semantics=("parallel",)),
    )(x.astype(jnp.float32))


# ---------------------------------------------------------------------------
# Kernel 2 (streaming path): one propagation hop, K-tiled over adj columns.
#   acc (f32 VMEM scratch) += adj_tile(bf16) @ rhs_tile(bf16)     [bf16 MXU]
#   at last k:  emb_out = bf16(acc)              (next layer's RHS)
#               fin_out = fin + acc  (or just acc on the first hop)
# ---------------------------------------------------------------------------
def _prop_kernel(*refs, add_fin, rhs_resident, tk):
    if add_fin:
        adj_ref, emb_ref, fin_ref, emb_out_ref, fin_out_ref, acc_ref = refs
    else:
        adj_ref, emb_ref, emb_out_ref, fin_out_ref, acc_ref = refs

    k = pl.program_id(1)

    @pl.when(k == 0)
    def _init():
        acc_ref[...] = jnp.zeros_like(acc_ref)

    if rhs_resident:
        rhs = emb_ref[pl.ds(pl.multiple_of(k * tk, LANE), tk), :]
    else:
        rhs = emb_ref[...]
    acc_ref[...] += jnp.dot(adj_ref[...], rhs,
                            preferred_element_type=jnp.float32)

    @pl.when(k == pl.num_programs(1) - 1)
    def _finalize():
        acc = acc_ref[...]
        emb_out_ref[...] = acc.astype(emb_out_ref.dtype)
        if add_fin:
            fin_out_ref[...] = fin_ref[...] + acc
        else:
            fin_out_ref[...] = acc


def propagate(adj_bf16, emb_bf16, fin=None, *, tile_m=1024, tile_k=2048):
    m, n = adj_bf16.shape
    dp = emb_bf16.shape[1]
    add_fin = fin is not None

    # >= 2 row blocks so both v7x TensorCores get work on the parallel axis;
    # 16-aligned sublanes match the native bf16 (16, 128) tile.
    tm = _pick_tile(m, min(tile_m, max(16, m // 2)), 16)
    tk = _pick_tile(n, tile_k, LANE)
    grid = (m // tm, n // tk)

    rhs_resident = n * dp * 2 <= RHS_RESIDENT_BYTES

    in_specs = [pl.BlockSpec((tm, tk), lambda i, k: (i, k))]          # adj tile
    if rhs_resident:
        in_specs.append(pl.BlockSpec((n, dp), lambda i, k: (0, 0)))   # whole RHS
    else:
        in_specs.append(pl.BlockSpec((tk, dp), lambda i, k: (k, 0)))
    inputs = [adj_bf16, emb_bf16]
    io_aliases = {}
    if add_fin:
        in_specs.append(pl.BlockSpec((tm, dp), lambda i, k: (i, 0)))  # running fin
        inputs.append(fin)
        io_aliases = {2: 1}         # accumulate fin in place (no new HBM alloc)

    # double-buffered inputs/outputs + f32 accumulator, with 2x headroom
    vmem = 2 * (2 * tm * tk
                + 2 * dp * (n if rhs_resident else tk)
                + 2 * tm * dp
                + 8 * tm * dp) + 4 * tm * dp
    vmem_limit = int(min(64 * _MIB, max(2 * vmem, 16 * _MIB)))

    rhs_reads = 1 if rhs_resident else (m // tm)
    cost = pl.CostEstimate(
        flops=2 * m * n * dp, transcendentals=0,
        bytes_accessed=(2 * m * n + 2 * rhs_reads * n * dp
                        + 6 * m * dp + (4 * m * dp if add_fin else 0)))

    return pl.pallas_call(
        functools.partial(_prop_kernel, add_fin=add_fin,
                          rhs_resident=rhs_resident, tk=tk),
        out_shape=(jax.ShapeDtypeStruct((m, dp), jnp.bfloat16),   # next RHS
                   jax.ShapeDtypeStruct((m, dp), jnp.float32)),   # running fin
        grid=grid,
        in_specs=in_specs,
        out_specs=(pl.BlockSpec((tm, dp), lambda i, k: (i, 0)),
                   pl.BlockSpec((tm, dp), lambda i, k: (i, 0))),
        scratch_shapes=[pltpu.VMEM((tm, dp), jnp.float32)],
        input_output_aliases=io_aliases,
        compiler_params=pltpu.CompilerParams(
            dimension_semantics=("parallel", "arbitrary"),
            vmem_limit_bytes=vmem_limit),
        cost_estimate=cost,
    )(*inputs)


# ---------------------------------------------------------------------------
# Kernel 3 (fused path, adj fits in VMEM): DMA adj once, run every hop and the
# running sum inside a single kernel invocation.  bf16 MXU, f32 accumulation.
# ---------------------------------------------------------------------------
def _fused_prop_kernel(adj_ref, emb_ref, fin_ref, *, layers):
    adj = adj_ref[...]                         # (n, n)  bf16, VMEM-resident
    emb = emb_ref[...]                         # (n, dp) bf16
    fin = None
    for l in range(layers):                    # static unroll (layers is small)
        hop = jnp.dot(adj, emb, preferred_element_type=jnp.float32)
        fin = hop if l == 0 else fin + hop
        if l + 1 < layers:
            emb = hop.astype(jnp.bfloat16)
    fin_ref[...] = fin


def propagate_fused(adj_bf16, emb_bf16, layers):
    n = adj_bf16.shape[0]
    dp = emb_bf16.shape[1]
    adj_bytes = 2 * n * n
    # adj (possibly double-buffered) + an in-kernel value copy + hop temps
    vmem = 3 * adj_bytes + (layers + 3) * 6 * n * dp
    vmem_limit = int(min(64 * _MIB, max(vmem + 8 * _MIB, 24 * _MIB)))
    cost = pl.CostEstimate(
        flops=2 * layers * n * n * dp, transcendentals=0,
        bytes_accessed=adj_bytes + 2 * n * dp + 4 * n * dp)
    return pl.pallas_call(
        functools.partial(_fused_prop_kernel, layers=layers),
        out_shape=jax.ShapeDtypeStruct((n, dp), jnp.float32),
        grid=(1,),
        in_specs=[pl.BlockSpec((n, n), lambda i: (0, 0)),
                  pl.BlockSpec((n, dp), lambda i: (0, 0))],
        out_specs=pl.BlockSpec((n, dp), lambda i: (0, 0)),
        compiler_params=pltpu.CompilerParams(
            dimension_semantics=("arbitrary",),
            vmem_limit_bytes=vmem_limit),
        cost_estimate=cost,
    )(adj_bf16, emb_bf16)


# ---------------------------------------------------------------------------
# JAX/Pallas port of TopoEncoder
# ---------------------------------------------------------------------------
class TopoEncoder:
    def __init__(self, latdim=LATDIM, gnn_layer=GNN_LAYER,
                 fuse_adj_bytes=FUSE_ADJ_BYTES):
        self.latdim = latdim
        self.gnn_layer = gnn_layer
        self.fuse_adj_bytes = fuse_adj_bytes

    def __call__(self, adj, embeds, normed=False):
        return self.forward(adj, embeds, normed)

    def forward(self, adj, embeds, normed=False):
        n0, d = embeds.shape
        assert d == self.latdim and adj.shape == (n0, n0)

        # Pad the node axis to a multiple of 128 so every tile is legal and
        # no full-extent fallback block is ever produced; padded rows/cols are
        # zero and are sliced off at the end (LN keeps zero rows at zero).
        n = _round_up(n0, LANE)
        dp = _round_up(d, LANE)
        if n != n0:
            adj = jnp.pad(adj, ((0, n - n0), (0, n - n0)))
            embeds = jnp.pad(embeds, ((0, n - n0), (0, 0)))

        if self.gnn_layer == 0:
            if normed:
                return jax.lax.stop_gradient(embeds[:n0])
            out = layernorm_pad(embeds, dp, out_dtype=jnp.float32)
            return jax.lax.stop_gradient(out[:n0, :d])

        # LayerNorm fused with the lane padding; bf16 output feeds the bf16 MXU.
        if normed:
            emb = jnp.pad(embeds.astype(jnp.bfloat16), ((0, 0), (0, dp - d)))
        else:
            emb = layernorm_pad(embeds, dp, out_dtype=jnp.bfloat16)

        # 0/1 adjacency -> bf16 is exact and halves the dominant HBM stream.
        adj_bf16 = adj.astype(jnp.bfloat16)

        if 2 * n * n <= self.fuse_adj_bytes:
            fin = propagate_fused(adj_bf16, emb, self.gnn_layer)  # adj read once
        else:
            fin = None
            for _ in range(self.gnn_layer):
                emb, fin = propagate(adj_bf16, emb, fin)

        return jax.lax.stop_gradient(fin[:n0, :d])


# ---------------------------------------------------------------------------
if __name__ == "__main__":
    key = jax.random.PRNGKey(0)
    k_adj, k_emb = jax.random.split(key)

    N = 1024  # exercises 2 row blocks x K-tiled grid in the streaming path
    adj = (jax.random.uniform(k_adj, (N, N)) < 0.05).astype(jnp.float32)
    embeds = jax.random.normal(k_emb, (N, LATDIM), dtype=jnp.float32)

    # plain-JAX reference (torch semantics: LayerNorm, then sum of hops 1..L)
    mean = embeds.mean(-1, keepdims=True)
    var = ((embeds - mean) ** 2).mean(-1, keepdims=True)
    ln_ref = (embeds - mean) / jnp.sqrt(var + LN_EPS)
    h, ref = ln_ref, jnp.zeros_like(ln_ref)
    for _ in range(GNN_LAYER):
        h = jnp.dot(adj, h, precision=jax.lax.Precision.HIGHEST)
        ref = ref + h

    def check(name, out, want, rel):
        assert out.shape == want.shape, (name, out.shape, want.shape)
        assert bool(jnp.all(jnp.isfinite(out))), name
        err = float(jnp.max(jnp.abs(out - want)))
        tol = rel * (float(jnp.max(jnp.abs(want))) + 1e-6)
        assert err <= tol, (name, err, tol)

    # fused path: adj resident in VMEM, all hops in one kernel
    enc = TopoEncoder(latdim=LATDIM, gnn_layer=GNN_LAYER)
    out_fused = jax.block_until_ready(enc.forward(adj, embeds, normed=False))
    check("fused", out_fused, ref, 1e-2)

    # streaming path: adj tiled from HBM, one kernel per hop
    enc_s = TopoEncoder(latdim=LATDIM, gnn_layer=GNN_LAYER, fuse_adj_bytes=0)
    out_stream = jax.block_until_ready(enc_s.forward(adj, embeds, normed=False))
    check("stream", out_stream, ref, 1e-2)

    # gnn_layer == 0 path: LayerNorm only (f32 throughout)
    enc0 = TopoEncoder(latdim=LATDIM, gnn_layer=0)
    out_ln = jax.block_until_ready(enc0.forward(adj, embeds, normed=False))
    check("layernorm", out_ln, ln_ref, 1e-4)

    print("KERNEL_OK")
</pallas_src>

<mosaic_0001>
module attributes {stable_mosaic.version = 11 : i64} {
  func.func @_layernorm_pad_kernel(%arg0: i32, %arg1: memref<512x8xf32, #tpu.memory_space<vmem>>, %arg2: memref<512x128xbf16, #tpu.memory_space<vmem>>) attributes {dimension_semantics = [#tpu.dimension_semantics<parallel>], iteration_bounds = array<i64: 2>, scalar_prefetch = 0 : i64, scratch_operands = 0 : i64, tpu.core_type = #tpu.core_type<tc>, window_params = [{transform_indices = @transform_0, window_bounds = array<i64: 512, 8>}, {transform_indices = @transform_1, window_bounds = array<i64: 512, 128>}]} {
    %c0 = arith.constant 0 : index
    %c0_0 = arith.constant 0 : index
    %0 = vector.load %arg1[%c0, %c0_0] : memref<512x8xf32, #tpu.memory_space<vmem>>, vector<512x8xf32>
    %cst = arith.constant dense<0.000000e+00> : vector<512xf32>
    %1 = vector.multi_reduction <add>, %0, %cst [1] : vector<512x8xf32> to vector<512xf32>
    %2 = vector.shape_cast %1 : vector<512xf32> to vector<512x1xf32>
    %cst_1 = arith.constant 1.250000e-01 : f32
    %3 = vector.broadcast %cst_1 : f32 to vector<512x1xf32>
    %4 = arith.mulf %2, %3 : vector<512x1xf32>
    %5 = vector.broadcast %4 : vector<512x1xf32> to vector<512x8xf32>
    %6 = arith.subf %0, %5 : vector<512x8xf32>
    %7 = arith.mulf %6, %6 : vector<512x8xf32>
    %cst_2 = arith.constant dense<0.000000e+00> : vector<512xf32>
    %8 = vector.multi_reduction <add>, %7, %cst_2 [1] : vector<512x8xf32> to vector<512xf32>
    %9 = vector.shape_cast %8 : vector<512xf32> to vector<512x1xf32>
    %cst_3 = arith.constant 1.250000e-01 : f32
    %10 = vector.broadcast %cst_3 : f32 to vector<512x1xf32>
    %11 = arith.mulf %9, %10 : vector<512x1xf32>
    %cst_4 = arith.constant 9.99999974E-6 : f32
    %12 = vector.broadcast %cst_4 : f32 to vector<512x1xf32>
    %13 = arith.addf %11, %12 : vector<512x1xf32>
    %14 = math.rsqrt %13 : vector<512x1xf32>
    %15 = vector.broadcast %14 : vector<512x1xf32> to vector<512x8xf32>
    %16 = arith.mulf %6, %15 : vector<512x8xf32>
    %cst_5 = arith.constant 0.000000e+00 : bf16
    %17 = vector.broadcast %cst_5 : bf16 to vector<512x128xbf16>
    %c0_6 = arith.constant 0 : index
    %c0_7 = arith.constant 0 : index
    %18 = vector.load %arg2[%c0_6, %c0_7] : memref<512x128xbf16, #tpu.memory_space<vmem>>, vector<512x128xbf16>
    tpu.vector_store %arg2[%c0_6, %c0_7], %17 {strides = array<i32>} : memref<512x128xbf16, #tpu.memory_space<vmem>>, vector<512x128xbf16>,
    %19 = arith.truncf %16 : vector<512x8xf32> to vector<512x8xbf16>
    %c0_8 = arith.constant 0 : index
    %c0_9 = arith.constant 0 : index
    %20 = vector.load %arg2[%c0_8, %c0_9] : memref<512x128xbf16, #tpu.memory_space<vmem>>, vector<512x8xbf16>
    tpu.vector_store %arg2[%c0_8, %c0_9], %19 {strides = array<i32>} : memref<512x128xbf16, #tpu.memory_space<vmem>>, vector<512x8xbf16>,
    return
  }
  func.func @transform_0(%arg0: i32) -> (i32, i32) {
    %c0_i32 = arith.constant 0 : i32
    %c0_i32_0 = arith.constant 0 : i32
    return %arg0, %c0_i32 : i32, i32
  }
  func.func @transform_1(%arg0: i32) -> (i32, i32) {
    %c0_i32 = arith.constant 0 : i32
    %c0_i32_0 = arith.constant 0 : i32
    return %arg0, %c0_i32 : i32, i32
  }
}

</mosaic_0001>

<bundles_post_ra>
// kernel: tpu_custom_call.1
= control target key start
LH: loop header
LB: loop body
LE: loop exit
PB: predicated region body
PF: predicated region fallthrough
CT: control target
= control target key end

     0   :  { %6 = vsyncpa [#allocation3], 0  ;;  %s3010_s0 = inlined_call_operand.vmem [shape: f32[1024,8], index: 0, kind: input, shape index: {}]   ;;  %s3011_s1 = inlined_call_operand.hbm [shape: bf16[1024,128], index: 1, kind: output, shape index: {}]  }
   0x1   :  { %8 = vsyncpa [#allocation3 + $0x1], 0  ;;  %s1866_s6 = smov 0   ;;  %s1868_s7 = smov 0  }
   0x2   :  { %s1870_s8 = smov 0   ;;  %s1872_s9 = smov 0  }
   0x3 LB: > { %s1887_s10 = sadd.s32 4294967295, %s1850_s9   ;;  %s1477_s11 = sadd.s32 4294967294, %s1850_s9   ;;  %s1850_s9 = sphi %s1872_s9, %s3110_s9   ;;  %s1846_s8 = sphi %s1870_s8, %s3109_s8   ;;  %s1842_s7 = sphi %s1868_s7, %s3108_s7   ;;  %s1838_s6 = sphi %s1866_s6, %s3107_s6  }
   0x4   : > { %s1891_s12 = sadd.s32 1, %s1850_s9   ;;  %s47_s13 = sadd.s32 1, %s1846_s8 }
   0x5   : > { %s44_s14 = ssub.s32 %s1850_s9, %s1891_s12  ;;  %p57_p0 = scmp.ne.s32.totalorder %s1846_s8, %s1842_s7 }
   0x6   : > { %p45_p1 = scmp.eq.s32.totalorder %s44_s14, 0  ;;  %p58_p2 = scmp.eq.s32.totalorder %s1887_s10, 1 }
   0x7   : > { %p63_p3 = scmp.ne.s32.totalorder %s1842_s7, %s1838_s6  ;;  %p64_p4 = scmp.eq.s32.totalorder %s1477_s11, 1 }
   0x8   : > { %s1902_s15 = scalar_select %p45_p1, %s1846_s8, %s47_s13  }
   0x9   : > { %p1904_p5 = por %p58_p2, %p57_p0  ;;  %p1908_p6 = por %p64_p4, %p63_p3 }
   0xa   : > { %p1480_p7 = scmp.ge.s32.totalorder %s1850_s9, 1  ;;  %p91_p8 = scmp.lt.s32.totalorder %s1850_s9, 3 }
   0xc   : > { %p92_p9 = pnand %p1480_p7, %p91_p8 }
   0xe   : > { %95 = sbr.rel (%p92_p9) target bundleno = 506 (0x1fa), region = 24 }
  0x15   : > { %s1482_s18 = sshll.u32 %s1887_s10, 6  ;;  %vm183_vm0 = vcmask 64512   ;;  %s108_s23 = sand.u32 1, %s1842_s7   ;;  %vm1336_vm1 = vcmask 60416  }
  0x16   : > { %p112_p10 = scmp.lt.s32.totalorder %s1482_s18, 127  ;;  %s1481_s24 = sshll.u32 %s108_s23, 8 }
  0x17   : > { %s2315_s25 = scalar_lea.vmem [#allocation2], %s1481_s24  ;;  %s1617_s26 = sshll.u32 %s1887_s10, 12 }
  0x18   : > { %s3112_s18 = smov (!%p112_p10, %s1482_s18), 127  ;;  %s1415_s27 = sshll.u32 %s2315_s25, 4  ;;  %s2963_s27 = int_to_ptr.vmem [resolvable:$true] %s1415_s27 }
  0x19   : > { %s1483_s19 = sshll.u32 %s3112_s18, 3  ;;  %s2961_s30 = scalar_lea.hbm %s3011_s1, %s1617_s26 }
  0x1a   : > { %s1918_s22 = scalar_lea.vmem %s3010_s0, %s1483_s19  ;;  %s2969_s2 = scalar_lea.sflag [#allocation3], %s108_s23 }
  0x1b   : > { %v1921_v0 = vld [vmem:[%s1918_s22] sm:$0xff]  ;;  %v1924_v1 = vld [vmem:[%s1918_s22 + $0x10] sm:$0xff]  ;;  %v1927_v2 = vld [vmem:[%s1918_s22 + $0x8] sm:$0xff]  ;;  %s1788_s3 = scalar_lea.vmem %s2963_s27, 4096  ;;  %s1853_s4 = smov [#allocation2]  }
  0x1c   : > { %v184_v3 = vsel %vm183_vm0, %v1921_v0, 0.0  ;;  %v190_v4 = vsel %vm183_vm0, %v1924_v1, 0.0  ;;  %v1934_v5 = vld [vmem:[%s1918_s22 + $0x18] sm:$0xff]  ;;  %v187_v6 = vsel %vm183_vm0, %v1927_v2, 0.0  ;;  %v1941_v8 = vld [vmem:[%s1918_s22 + $0x20] sm:$0xff]  ;;  %v1944_v9 = vld [vmem:[%s1918_s22 + $0x28] sm:$0xff]  ;;  %p1789_p11 = scmp.ne.s32.totalorder %s2963_s27, %s1788_s3 }
  0x1d   : > { %185 = vadd.xlane.f32.xlu0 %v184_v3  ;;  %191 = vadd.xlane.f32.xlu1 %v190_v4  ;;  %v193_v7 = vsel %vm183_vm0, %v1934_v5, 0.0  ;;  %v196_v10 = vsel %vm183_vm0, %v1941_v8, 0.0  ;;  %v199_v11 = vsel %vm183_vm0, %v1944_v9, 0.0  ;;  %v1951_v12 = vld [vmem:[%s1918_s22 + $0x30] sm:$0xff]  ;;  %v1954_v13 = vld [vmem:[%s1918_s22 + $0x38] sm:$0xff]  ;;  %v1961_v16 = vld [vmem:[%s1918_s22 + $0x40] sm:$0xff] }
  0x1e   : > { %v202_v14 = vsel %vm183_vm0, %v1951_v12, 0.0  ;;  %v205_v15 = vsel %vm183_vm0, %v1954_v13, 0.0  ;;  %v1964_v17 = vld [vmem:[%s1918_s22 + $0x48] sm:$0xff]  ;;  %v208_v18 = vsel %vm183_vm0, %v1961_v16, 0.0  ;;  %v1971_v20 = vld [vmem:[%s1918_s22 + $0x50] sm:$0xff]  ;;  %v1974_v21 = vld [vmem:[%s1918_s22 + $0x58] sm:$0xff]  ;;  %p1790_p12 = pnand %p1789_p11, %p1904_p5 }
  0x1f   : > { %v211_v19 = vsel %vm183_vm0, %v1964_v17, 0.0  ;;  %v214_v22 = vsel %vm183_vm0, %v1971_v20, 0.0  ;;  %v217_v23 = vsel %vm183_vm0, %v1974_v21, 0.0  ;;  %v1981_v24 = vld [vmem:[%s1918_s22 + $0x60] sm:$0xff]  ;;  %v1984_v25 = vld [vmem:[%s1918_s22 + $0x68] sm:$0xff]  ;;  %v1991_v28 = vld [vmem:[%s1918_s22 + $0x70] sm:$0xff] }
  0x20   : > { %v220_v26 = vsel %vm183_vm0, %v1981_v24, 0.0  ;;  %v223_v27 = vsel %vm183_vm0, %v1984_v25, 0.0  ;;  %v1994_v29 = vld [vmem:[%s1918_s22 + $0x78] sm:$0xff]  ;;  %v226_v30 = vsel %vm183_vm0, %v1991_v28, 0.0  ;;  %v2001_v32 = vld [vmem:[%s1918_s22 + $0x80] sm:$0xff]  ;;  %v2004_v33 = vld [vmem:[%s1918_s22 + $0x88] sm:$0xff]  ;;  %p1791_p13 = pneg %p1790_p12 }
  0x21   : > { %188 = vadd.xlane.f32.xlu0 %v187_v6  ;;  %194 = vadd.xlane.f32.xlu1 %v193_v7  ;;  %v229_v31 = vsel %vm183_vm0, %v1994_v29, 0.0  ;;  %v232_v34 = vsel %vm183_vm0, %v2001_v32, 0.0  ;;  %v235_v35 = vsel %vm183_vm0, %v2004_v33, 0.0  ;;  %v2011_v36 = vld [vmem:[%s1918_s22 + $0x90] sm:$0xff]  ;;  %v2014_v37 = vld [vmem:[%s1918_s22 + $0x98] sm:$0xff]  ;;  %v2021_v40 = vld [vmem:[%s1918_s22 + $0xa0] sm:$0xff] }
  0x22   : > { %v238_v38 = vsel %vm183_vm0, %v2011_v36, 0.0  ;;  %v241_v39 = vsel %vm183_vm0, %v2014_v37, 0.0  ;;  %v2024_v41 = vld [vmem:[%s1918_s22 + $0xa8] sm:$0xff]  ;;  %v244_v42 = vsel %vm183_vm0, %v2021_v40, 0.0  ;;  %v2031_v44 = vld [vmem:[%s1918_s22 + $0xb0] sm:$0xff]  ;;  %v2034_v45 = vld [vmem:[%s1918_s22 + $0xb8] sm:$0xff] }
  0x23   : > { %v247_v43 = vsel %vm183_vm0, %v2024_v41, 0.0  ;;  %v250_v46 = vsel %vm183_vm0, %v2031_v44, 0.0  ;;  %v253_v47 = vsel %vm183_vm0, %v2034_v45, 0.0  ;;  %v2041_v48 = vld [vmem:[%s1918_s22 + $0xc0] sm:$0xff]  ;;  %v2044_v49 = vld [vmem:[%s1918_s22 + $0xc8] sm:$0xff]  ;;  %v2051_v52 = vld [vmem:[%s1918_s22 + $0xd0] sm:$0xff] }
  0x24   : > { %v256_v50 = vsel %vm183_vm0, %v2041_v48, 0.0  ;;  %v259_v51 = vsel %vm183_vm0, %v2044_v49, 0.0  ;;  %v2054_v53 = vld [vmem:[%s1918_s22 + $0xd8] sm:$0xff]  ;;  %v262_v54 = vsel %vm183_vm0, %v2051_v52, 0.0  ;;  %v2061_v56 = vld [vmem:[%s1918_s22 + $0xe0] sm:$0xff]  ;;  %v2064_v57 = vld [vmem:[%s1918_s22 + $0xe8] sm:$0xff] }
  0x25   : > { %197 = vadd.xlane.f32.xlu0 %v196_v10  ;;  %200 = vadd.xlane.f32.xlu1 %v199_v11  ;;  %v265_v55 = vsel %vm183_vm0, %v2054_v53, 0.0  ;;  %v268_v58 = vsel %vm183_vm0, %v2061_v56, 0.0  ;;  %v271_v59 = vsel %vm183_vm0, %v2064_v57, 0.0  ;;  %v2071_v60 = vld [vmem:[%s1918_s22 + $0xf0] sm:$0xff]  ;;  %v2074_v61 = vld [vmem:[%s1918_s22 + $0xf8] sm:$0xff]  ;;  %v2081_v3 = vld [vmem:[%s1918_s22 + $0x100] sm:$0xff] }
  0x26   : > { %v274_v62 = vsel %vm183_vm0, %v2071_v60, 0.0  ;;  %v277_v63 = vsel %vm183_vm0, %v2074_v61, 0.0  ;;  %v2084_v4 = vld [vmem:[%s1918_s22 + $0x108] sm:$0xff]  ;;  %v280_v6 = vsel %vm183_vm0, %v2081_v3, 0.0  ;;  %v2091_v10 = vld [vmem:[%s1918_s22 + $0x110] sm:$0xff]  ;;  %v2094_v11 = vld [vmem:[%s1918_s22 + $0x118] sm:$0xff] }
  0x27   : > { %v283_v7 = vsel %vm183_vm0, %v2084_v4, 0.0  ;;  %s1792_s5 = sshll.u32 %s1853_s4, 4  ;;  %s1793_s5 = int_to_ptr.vmem [resolvable:$false] %s1792_s5 }
  0x28   : > { %s1794_s10 = scalar_lea.vmem %s1793_s5, 8192  ;;  %p1795_p0 = scmp.lt.s32.totalorder %s2963_s27, %s1793_s5 }
  0x29   : > { %203 = vadd.xlane.f32.xlu0 %v202_v14  ;;  %206 = vadd.xlane.f32.xlu1 %v205_v15  ;;  %v286_v14 = vsel %vm183_vm0, %v2091_v10, 0.0  ;;  %v289_v15 = vsel %vm183_vm0, %v2094_v11, 0.0  ;;  %p1796_p1 = scmp.lt.s32.totalorder %s1794_s10, %s1788_s3 }
  0x2b   : > { %p1797_p2 = por %p1796_p1, %p1795_p0 }
  0x2d   : > { %209 = vadd.xlane.f32.xlu0 %v208_v18  ;;  %212 = vadd.xlane.f32.xlu1 %v211_v19  ;;  %v2101_v18 = vld [vmem:[%s1918_s22 + $0x120] sm:$0xff]  ;;  %v2104_v19 = vld [vmem:[%s1918_s22 + $0x128] sm:$0xff]  ;;  %p1798_p3 = pnand %p1797_p2, %p1791_p13 }
  0x31   : > { %215 = vadd.xlane.f32.xlu0 %v214_v22  ;;  %218 = vadd.xlane.f32.xlu1 %v217_v23  ;;  %v292_v22 = vsel %vm183_vm0, %v2101_v18, 0.0  ;;  %v295_v23 = vsel %vm183_vm0, %v2104_v19, 0.0 }
  0x35   : > { %221 = vadd.xlane.f32.xlu0 %v220_v26  ;;  %224 = vadd.xlane.f32.xlu1 %v223_v27  ;;  %v2111_v26 = vld [vmem:[%s1918_s22 + $0x130] sm:$0xff]  ;;  %v2114_v27 = vld [vmem:[%s1918_s22 + $0x138] sm:$0xff] }
  0x39   : > { %227 = vadd.xlane.f32.xlu0 %v226_v30  ;;  %230 = vadd.xlane.f32.xlu1 %v229_v31  ;;  %v298_v30 = vsel %vm183_vm0, %v2111_v26, 0.0  ;;  %v301_v31 = vsel %vm183_vm0, %v2114_v27, 0.0 }
  0x3d   : > { %233 = vadd.xlane.f32.xlu0 %v232_v34  ;;  %236 = vadd.xlane.f32.xlu1 %v235_v35  ;;  %v2121_v34 = vld [vmem:[%s1918_s22 + $0x140] sm:$0xff]  ;;  %v2124_v35 = vld [vmem:[%s1918_s22 + $0x148] sm:$0xff] }
  0x41   : > { %239 = vadd.xlane.f32.xlu0 %v238_v38  ;;  %242 = vadd.xlane.f32.xlu1 %v241_v39  ;;  %v304_v38 = vsel %vm183_vm0, %v2121_v34, 0.0  ;;  %v307_v39 = vsel %vm183_vm0, %v2124_v35, 0.0 }
  0x45   : > { %245 = vadd.xlane.f32.xlu0 %v244_v42  ;;  %248 = vadd.xlane.f32.xlu1 %v247_v43  ;;  %v2131_v42 = vld [vmem:[%s1918_s22 + $0x150] sm:$0xff]  ;;  %v2134_v43 = vld [vmem:[%s1918_s22 + $0x158] sm:$0xff] }
  0x49   : > { %251 = vadd.xlane.f32.xlu0 %v250_v46  ;;  %254 = vadd.xlane.f32.xlu1 %v253_v47  ;;  %v310_v46 = vsel %vm183_vm0, %v2131_v42, 0.0  ;;  %v313_v47 = vsel %vm183_vm0, %v2134_v43, 0.0 }
  0x4d   : > { %257 = vadd.xlane.f32.xlu0 %v256_v50  ;;  %260 = vadd.xlane.f32.xlu1 %v259_v51  ;;  %v2141_v50 = vld [vmem:[%s1918_s22 + $0x160] sm:$0xff]  ;;  %v2144_v51 = vld [vmem:[%s1918_s22 + $0x168] sm:$0xff] }
  0x51   : > { %263 = vadd.xlane.f32.xlu0 %v262_v54  ;;  %266 = vadd.xlane.f32.xlu1 %v265_v55  ;;  %v316_v54 = vsel %vm183_vm0, %v2141_v50, 0.0  ;;  %v319_v55 = vsel %vm183_vm0, %v2144_v51, 0.0 }
  0x55   : > { %269 = vadd.xlane.f32.xlu0 %v268_v58  ;;  %272 = vadd.xlane.f32.xlu1 %v271_v59  ;;  %v2151_v58 = vld [vmem:[%s1918_s22 + $0x170] sm:$0xff]  ;;  %v2154_v59 = vld [vmem:[%s1918_s22 + $0x178] sm:$0xff] }
  0x59   : > { %275 = vadd.xlane.f32.xlu0 %v274_v62  ;;  %278 = vadd.xlane.f32.xlu1 %v277_v63  ;;  %v322_v62 = vsel %vm183_vm0, %v2151_v58, 0.0  ;;  %v325_v63 = vsel %vm183_vm0, %v2154_v59, 0.0 }
  0x5d   : > { %281 = vadd.xlane.f32.xlu0 %v280_v6  ;;  %284 = vadd.xlane.f32.xlu1 %v283_v7  ;;  %v2161_v6 = vld [vmem:[%s1918_s22 + $0x180] sm:$0xff]  ;;  %v2164_v7 = vld [vmem:[%s1918_s22 + $0x188] sm:$0xff] }
  0x61   : > { %287 = vadd.xlane.f32.xlu0 %v286_v14  ;;  %290 = vadd.xlane.f32.xlu1 %v289_v15  ;;  %v328_v14 = vsel %vm183_vm0, %v2161_v6, 0.0  ;;  %v331_v15 = vsel %vm183_vm0, %v2164_v7, 0.0 }
  0x65   : > { %293 = vadd.xlane.f32.xlu0 %v292_v22  ;;  %296 = vadd.xlane.f32.xlu1 %v295_v23  ;;  %v2171_v22 = vld [vmem:[%s1918_s22 + $0x190] sm:$0xff]  ;;  %v2174_v23 = vld [vmem:[%s1918_s22 + $0x198] sm:$0xff] }
  0x66   : > { %3045 = vst [vmem:[#allocation5_spill] sm:$0xff] %v2171_v22  ;;  %3046 = vst [vmem:[#allocation6_spill] sm:$0xff] %v2174_v23 }
  0x69   : > { %299 = vadd.xlane.f32.xlu0 %v298_v30  ;;  %302 = vadd.xlane.f32.xlu1 %v301_v31  ;;  %v334_v30 = vsel %vm183_vm0, %v2171_v22, 0.0  ;;  %v337_v31 = vsel %vm183_vm0, %v2174_v23, 0.0 }
  0x6d   : > { %305 = vadd.xlane.f32.xlu0 %v304_v38  ;;  %308 = vadd.xlane.f32.xlu1 %v307_v39  ;;  %v2181_v38 = vld [vmem:[%s1918_s22 + $0x1a0] sm:$0xff]  ;;  %v2184_v39 = vld [vmem:[%s1918_s22 + $0x1a8] sm:$0xff] }
  0x6e   : > { %3047 = vst [vmem:[#allocation7_spill] sm:$0xff] %v2181_v38  ;;  %3048 = vst [vmem:[#allocation8_spill] sm:$0xff] %v2184_v39 }
  0x71   : > { %311 = vadd.xlane.f32.xlu0 %v310_v46  ;;  %314 = vadd.xlane.f32.xlu1 %v313_v47  ;;  %v340_v46 = vsel %vm183_vm0, %v2181_v38, 0.0  ;;  %v343_v47 = vsel %vm183_vm0, %v2184_v39, 0.0 }
  0x75   : > { %317 = vadd.xlane.f32.xlu0 %v316_v54  ;;  %320 = vadd.xlane.f32.xlu1 %v319_v55  ;;  %v2191_v54 = vld [vmem:[%s1918_s22 + $0x1b0] sm:$0xff]  ;;  %v2194_v55 = vld [vmem:[%s1918_s22 + $0x1b8] sm:$0xff] }
  0x76   : > { %3049 = vst [vmem:[#allocation9_spill] sm:$0xff] %v2191_v54  ;;  %3050 = vst [vmem:[#allocation10_spill] sm:$0xff] %v2194_v55 }
  0x79   : > { %323 = vadd.xlane.f32.xlu0 %v322_v62  ;;  %326 = vadd.xlane.f32.xlu1 %v325_v63  ;;  %v346_v62 = vsel %vm183_vm0, %v2191_v54, 0.0  ;;  %v349_v63 = vsel %vm183_vm0, %v2194_v55, 0.0  ;;  %v2224_v54 = vld [vmem:[%s1918_s22 + $0x1e8] sm:$0xff] }
  0x7a   : > { %3056 = vst [vmem:[#allocation16_spill] sm:$0xff] %v2224_v54 }
  0x7d   : > { %329 = vadd.xlane.f32.xlu0 %v328_v14  ;;  %332 = vadd.xlane.f32.xlu1 %v331_v15  ;;  %v2201_v14 = vld [vmem:[%s1918_s22 + $0x1c0] sm:$0xff]  ;;  %v2204_v15 = vld [vmem:[%s1918_s22 + $0x1c8] sm:$0xff] }
  0x7e   : > { %3051 = vst [vmem:[#allocation11_spill] sm:$0xff] %v2201_v14  ;;  %3052 = vst [vmem:[#allocation12_spill] sm:$0xff] %v2204_v15 }
  0x81   : > { %335 = vadd.xlane.f32.xlu0 %v334_v30  ;;  %338 = vadd.xlane.f32.xlu1 %v337_v31  ;;  %v352_v30 = vsel %vm183_vm0, %v2201_v14, 0.0  ;;  %v355_v31 = vsel %vm183_vm0, %v2204_v15, 0.0  ;;  %v367_v14 = vsel %vm183_vm0, %v2224_v54, 0.0 }
  0x85   : > { %341 = vadd.xlane.f32.xlu0 %v340_v46  ;;  %344 = vadd.xlane.f32.xlu1 %v343_v47  ;;  %v2211_v46 = vld [vmem:[%s1918_s22 + $0x1d0] sm:$0xff]  ;;  %v2214_v47 = vld [vmem:[%s1918_s22 + $0x1d8] sm:$0xff] }
  0x86   : > { %3053 = vst [vmem:[#allocation13_spill] sm:$0xff] %v2211_v46  ;;  %3054 = vst [vmem:[#allocation14_spill] sm:$0xff] %v2214_v47  ;;  %v358_v55 = vsel %vm183_vm0, %v2211_v46, 0.0 }
  0x89   : > { %347 = vadd.xlane.f32.xlu0 %v346_v62  ;;  %350 = vadd.xlane.f32.xlu1 %v349_v63  ;;  %v361_v62 = vsel %vm183_vm0, %v2214_v47, 0.0  ;;  %v2221_v63 = vld [vmem:[%s1918_s22 + $0x1e0] sm:$0xff] }
  0x8a   : > { %3055 = vst [vmem:[#allocation15_spill] sm:$0xff] %v2221_v63  ;;  %v364_v15 = vsel %vm183_vm0, %v2221_v63, 0.0 }
  0x8d   : > { %353 = vadd.xlane.f32.xlu0 %v352_v30  ;;  %356 = vadd.xlane.f32.xlu1 %v355_v31  ;;  %v2231_v30 = vld [vmem:[%s1918_s22 + $0x1f0] sm:$0xff]  ;;  %v2234_v31 = vld [vmem:[%s1918_s22 + $0x1f8] sm:$0xff] }
  0x8e   : > { %3057 = vst [vmem:[#allocation17_spill] sm:$0xff] %v2231_v30  ;;  %v370_v47 = vsel %vm183_vm0, %v2231_v30, 0.0  ;;  %v373_v46 = vsel %vm183_vm0, %v2234_v31, 0.0 }
  0x91   : > { %359 = vadd.xlane.f32.xlu0 %v358_v55  ;;  %362 = vadd.xlane.f32.xlu1 %v361_v62 }
  0x95   : > { %365 = vadd.xlane.f32.xlu0 %v364_v15  ;;  %368 = vadd.xlane.f32.xlu1 %v367_v14 }
  0x99   : > { %371 = vadd.xlane.f32.xlu0 %v370_v47  ;;  %374 = vadd.xlane.f32.xlu1 %v373_v46 }
  0xaa   : > { %v186_v55 = vpop.xlane.xlu0 %185  ;;  %v192_v62 = vpop.xlane.xlu1 %191 }
  0xab   : > { %v376_v63 = vmul.f32 0.125, %v186_v55  ;;  %v378_v39 = vmul.f32 0.125, %v192_v62 }
  0xad   : > { %v2241_v54 = vsub.f32 %v1921_v0, %v376_v63  ;;  %v2244_v38 = vsub.f32 %v1924_v1, %v378_v39 }
  0xae   : > { %v189_v15 = vpop.xlane.xlu0 %188  ;;  %v195_v14 = vpop.xlane.xlu1 %194 }
  0xaf   : > { %3058 = vst [vmem:[#allocation18_spill] sm:$0xff] %v2244_v38  ;;  %v377_v23 = vmul.f32 0.125, %v189_v15  ;;  %v379_v22 = vmul.f32 0.125, %v195_v14  ;;  %v504_v30 = vmul.f32 %v2241_v54, %v2241_v54  ;;  %v506_v46 = vmul.f32 %v2244_v38, %v2244_v38 }
  0xb1   : > { %v2251_v47 = vsub.f32 %v1927_v2, %v377_v23  ;;  %v2254_v55 = vsub.f32 %v1934_v5, %v379_v22  ;;  %v568_v0 = vsel %vm183_vm0, %v504_v30, 0.0  ;;  %v574_v63 = vsel %vm183_vm0, %v506_v46, 0.0 }
  0xb2   : > { %569 = vadd.xlane.f32.xlu0 %v568_v0  ;;  %v198_v1 = vpop.xlane.xlu0 %197  ;;  %v201_v39 = vpop.xlane.xlu1 %200 }
  0xb3   : > { %v380_v62 = vmul.f32 0.125, %v198_v1  ;;  %v381_v15 = vmul.f32 0.125, %v201_v39  ;;  %v505_v14 = vmul.f32 %v2251_v47, %v2251_v47  ;;  %v507_v38 = vmul.f32 %v2254_v55, %v2254_v55 }
  0xb5   : > { %v2263_v2 = vsub.f32 %v1941_v8, %v380_v62  ;;  %v2266_v5 = vsub.f32 %v1944_v9, %v381_v15  ;;  %v571_v22 = vsel %vm183_vm0, %v505_v14, 0.0  ;;  %v577_v46 = vsel %vm183_vm0, %v507_v38, 0.0 }
  0xb6   : > { %575 = vadd.xlane.f32.xlu0 %v574_v63  ;;  %572 = vadd.xlane.f32.xlu1 %v571_v22  ;;  %v204_v23 = vpop.xlane.xlu0 %203  ;;  %v207_v30 = vpop.xlane.xlu1 %206 }
  0xb7   : > { %v382_v0 = vmul.f32 0.125, %v204_v23  ;;  %v383_v1 = vmul.f32 0.125, %v207_v30  ;;  %v508_v39 = vmul.f32 %v2263_v2, %v2263_v2  ;;  %v509_v8 = vmul.f32 %v2266_v5, %v2266_v5 }
  0xb9   : > { %v2275_v62 = vsub.f32 %v1951_v12, %v382_v0  ;;  %v2278_v9 = vsub.f32 %v1954_v13, %v383_v1  ;;  %v580_v63 = vsel %vm183_vm0, %v508_v39, 0.0  ;;  %v583_v14 = vsel %vm183_vm0, %v509_v8, 0.0 }
  0xba   : > { %578 = vadd.xlane.f32.xlu1 %v577_v46  ;;  %581 = vadd.xlane.f32.xlu0 %v580_v63  ;;  %v210_v15 = vpop.xlane.xlu0 %209  ;;  %v213_v38 = vpop.xlane.xlu1 %212 }
  0xbb   : > { %v384_v22 = vmul.f32 0.125, %v210_v15  ;;  %v385_v23 = vmul.f32 0.125, %v213_v38  ;;  %v510_v30 = vmul.f32 %v2275_v62, %v2275_v62  ;;  %v511_v12 = vmul.f32 %v2278_v9, %v2278_v9 }
  0xbd   : > { %v2287_v13 = vsub.f32 %v1961_v16, %v384_v22  ;;  %v2290_v46 = vsub.f32 %v1964_v17, %v385_v23  ;;  %v586_v0 = vsel %vm183_vm0, %v510_v30, 0.0  ;;  %v589_v8 = vsel %vm183_vm0, %v511_v12, 0.0 }
  0xbe   : > { %584 = vadd.xlane.f32.xlu1 %v583_v14  ;;  %587 = vadd.xlane.f32.xlu0 %v586_v0  ;;  %v216_v1 = vpop.xlane.xlu0 %215  ;;  %v219_v39 = vpop.xlane.xlu1 %218 }
  0xbf   : > { %v386_v63 = vmul.f32 0.125, %v216_v1  ;;  %v387_v15 = vmul.f32 0.125, %v219_v39  ;;  %v512_v38 = vmul.f32 %v2287_v13, %v2287_v13  ;;  %v513_v16 = vmul.f32 %v2290_v46, %v2290_v46 }
  0xc1   : > { %v2302_v17 = vsub.f32 %v1971_v20, %v386_v63  ;;  %v2305_v14 = vsub.f32 %v1974_v21, %v387_v15  ;;  %v592_v22 = vsel %vm183_vm0, %v512_v38, 0.0  ;;  %v2313_v12 = vsel %vm183_vm0, %v513_v16, 0.0 }
  0xc2   : > { %590 = vadd.xlane.f32.xlu1 %v589_v8  ;;  %593 = vadd.xlane.f32.xlu0 %v592_v22  ;;  %v2308_v23 = vpop.xlane.xlu0 %221  ;;  %v2310_v30 = vpop.xlane.xlu1 %224  ;;  %v1852_v20 = vmov 0  }
  0xc3   : > { %1016 = vst [vmem:[%s2315_s25] sm:$0xf] %v1852_v20  ;;  %1017 = vst [vmem:[%s2315_s25 + $0x4] sm:$0xf] %v1852_v20  ;;  %v388_v21 = vmul.f32 0.125, %v2308_v23  ;;  %v389_v0 = vmul.f32 0.125, %v2310_v30  ;;  %v514_v1 = vmul.f32 %v2302_v17, %v2302_v17  ;;  %v515_v39 = vmul.f32 %v2305_v14, %v2305_v14 }
  0xc4   : > { %1018 = vst [vmem:[%s2315_s25 + $0x8] sm:$0xf] %v1852_v20  ;;  %1019 = vst [vmem:[%s2315_s25 + $0xc] sm:$0xf] %v1852_v20 }
  0xc5   : > { %1020 = vst [vmem:[%s2315_s25 + $0x10] sm:$0xf] %v1852_v20  ;;  %1021 = vst [vmem:[%s2315_s25 + $0x14] sm:$0xf] %v1852_v20  ;;  %v2452_v8 = vsub.f32 %v1981_v24, %v388_v21  ;;  %v2455_v63 = vsub.f32 %v1984_v25, %v389_v0  ;;  %v598_v15 = vsel %vm183_vm0, %v514_v1, 0.0  ;;  %v601_v22 = vsel %vm183_vm0, %v515_v39, 0.0 }
  0xc6   : > { %1022 = vst [vmem:[%s2315_s25 + $0x18] sm:$0xf] %v1852_v20  ;;  %1023 = vst [vmem:[%s2315_s25 + $0x1c] sm:$0xf] %v1852_v20  ;;  %596 = vadd.xlane.f32.xlu1 %v2313_v12  ;;  %599 = vadd.xlane.f32.xlu0 %v598_v15  ;;  %v228_v38 = vpop.xlane.xlu0 %227  ;;  %v231_v16 = vpop.xlane.xlu1 %230 }
  0xc7   : > { %1024 = vst [vmem:[%s2315_s25 + $0x20] sm:$0xf] %v1852_v20  ;;  %1025 = vst [vmem:[%s2315_s25 + $0x24] sm:$0xf] %v1852_v20  ;;  %v390_v23 = vmul.f32 0.125, %v228_v38  ;;  %v391_v30 = vmul.f32 0.125, %v231_v16  ;;  %v517_v24 = vmul.f32 %v2455_v63, %v2455_v63 }
  0xc8   : > { %1026 = vst [vmem:[%s2315_s25 + $0x28] sm:$0xf] %v1852_v20  ;;  %1027 = vst [vmem:[%s2315_s25 + $0x2c] sm:$0xf] %v1852_v20 }
  0xc9   : > { %1028 = vst [vmem:[%s2315_s25 + $0x30] sm:$0xf] %v1852_v20  ;;  %1029 = vst [vmem:[%s2315_s25 + $0x34] sm:$0xf] %v1852_v20  ;;  %v2465_v25 = vsub.f32 %v1991_v28, %v390_v23  ;;  %v2468_v21 = vsub.f32 %v1994_v29, %v391_v30  ;;  %v607_v39 = vsel %vm183_vm0, %v517_v24, 0.0 }
  0xca   : > { %1030 = vst [vmem:[%s2315_s25 + $0x38] sm:$0xf] %v1852_v20  ;;  %1031 = vst [vmem:[%s2315_s25 + $0x3c] sm:$0xf] %v1852_v20  ;;  %602 = vadd.xlane.f32.xlu1 %v601_v22  ;;  %v234_v0 = vpop.xlane.xlu0 %233  ;;  %v237_v1 = vpop.xlane.xlu1 %236 }
  0xcb   : > { %1032 = vst [vmem:[%s2315_s25 + $0x40] sm:$0xf] %v1852_v20  ;;  %1033 = vst [vmem:[%s2315_s25 + $0x44] sm:$0xf] %v1852_v20  ;;  %v392_v15 = vmul.f32 0.125, %v234_v0  ;;  %v393_v38 = vmul.f32 0.125, %v237_v1  ;;  %v518_v16 = vmul.f32 %v2465_v25, %v2465_v25  ;;  %v519_v28 = vmul.f32 %v2468_v21, %v2468_v21 }
  0xcc   : > { %1034 = vst [vmem:[%s2315_s25 + $0x48] sm:$0xf] %v1852_v20  ;;  %1035 = vst [vmem:[%s2315_s25 + $0x4c] sm:$0xf] %v1852_v20 }
  0xcd   : > { %1036 = vst [vmem:[%s2315_s25 + $0x50] sm:$0xf] %v1852_v20  ;;  %1037 = vst [vmem:[%s2315_s25 + $0x54] sm:$0xf] %v1852_v20  ;;  %v2477_v23 = vsub.f32 %v2001_v32, %v392_v15  ;;  %v2480_v29 = vsub.f32 %v2004_v33, %v393_v38  ;;  %v610_v22 = vsel %vm183_vm0, %v518_v16, 0.0  ;;  %v613_v24 = vsel %vm183_vm0, %v519_v28, 0.0 }
  0xce   : > { %1038 = vst [vmem:[%s2315_s25 + $0x58] sm:$0xf] %v1852_v20  ;;  %1039 = vst [vmem:[%s2315_s25 + $0x5c] sm:$0xf] %v1852_v20  ;;  %608 = vadd.xlane.f32.xlu1 %v607_v39  ;;  %v240_v30 = vpop.xlane.xlu0 %239 }
  0xcf   : > { %1040 = vst [vmem:[%s2315_s25 + $0x60] sm:$0xf] %v1852_v20  ;;  %1041 = vst [vmem:[%s2315_s25 + $0x64] sm:$0xf] %v1852_v20  ;;  %v520_v1 = vmul.f32 %v2477_v23, %v2477_v23  ;;  %v521_v32 = vmul.f32 %v2480_v29, %v2480_v29 }
  0xd0   : > { %1042 = vst [vmem:[%s2315_s25 + $0x68] sm:$0xf] %v1852_v20  ;;  %1043 = vst [vmem:[%s2315_s25 + $0x6c] sm:$0xf] %v1852_v20 }
  0xd1   : > { %1044 = vst [vmem:[%s2315_s25 + $0x70] sm:$0xf] %v1852_v20  ;;  %1045 = vst [vmem:[%s2315_s25 + $0x74] sm:$0xf] %v1852_v20  ;;  %v616_v39 = vsel %vm183_vm0, %v520_v1, 0.0  ;;  %v619_v28 = vsel %vm183_vm0, %v521_v32, 0.0 }
  0xd2   : > { %1046 = vst [vmem:[%s2315_s25 + $0x78] sm:$0xf] %v1852_v20  ;;  %1047 = vst [vmem:[%s2315_s25 + $0x7c] sm:$0xf] %v1852_v20  ;;  %614 = vadd.xlane.f32.xlu1 %v613_v24  ;;  %v246_v38 = vpop.xlane.xlu0 %245 }
  0xd3   : > { %1048 = vst [vmem:[%s2315_s25 + $0x80] sm:$0xf] %v1852_v20  ;;  %1049 = vst [vmem:[%s2315_s25 + $0x84] sm:$0xf] %v1852_v20 }
  0xd4   : > { %1050 = vst [vmem:[%s2315_s25 + $0x88] sm:$0xf] %v1852_v20  ;;  %1051 = vst [vmem:[%s2315_s25 + $0x8c] sm:$0xf] %v1852_v20 }
  0xd5   : > { %1052 = vst [vmem:[%s2315_s25 + $0x90] sm:$0xf] %v1852_v20  ;;  %1053 = vst [vmem:[%s2315_s25 + $0x94] sm:$0xf] %v1852_v20 }
  0xd6   : > { %1054 = vst [vmem:[%s2315_s25 + $0x98] sm:$0xf] %v1852_v20  ;;  %1055 = vst [vmem:[%s2315_s25 + $0x9c] sm:$0xf] %v1852_v20  ;;  %620 = vadd.xlane.f32.xlu1 %v619_v28 }
  0xd7   : > { %1056 = vst [vmem:[%s2315_s25 + $0xa0] sm:$0xf] %v1852_v20  ;;  %1057 = vst [vmem:[%s2315_s25 + $0xa4] sm:$0xf] %v1852_v20 }
  0xd8   : > { %1058 = vst [vmem:[%s2315_s25 + $0xa8] sm:$0xf] %v1852_v20  ;;  %1059 = vst [vmem:[%s2315_s25 + $0xac] sm:$0xf] %v1852_v20 }
  0xd9   : > { %1060 = vst [vmem:[%s2315_s25 + $0xb0] sm:$0xf] %v1852_v20  ;;  %1061 = vst [vmem:[%s2315_s25 + $0xb4] sm:$0xf] %v1852_v20 }
  0xda   : > { %1062 = vst [vmem:[%s2315_s25 + $0xb8] sm:$0xf] %v1852_v20  ;;  %1063 = vst [vmem:[%s2315_s25 + $0xbc] sm:$0xf] %v1852_v20 }
  0xdb   : > { %1064 = vst [vmem:[%s2315_s25 + $0xc0] sm:$0xf] %v1852_v20  ;;  %1065 = vst [vmem:[%s2315_s25 + $0xc4] sm:$0xf] %v1852_v20 }
  0xdc   : > { %1066 = vst [vmem:[%s2315_s25 + $0xc8] sm:$0xf] %v1852_v20  ;;  %1067 = vst [vmem:[%s2315_s25 + $0xcc] sm:$0xf] %v1852_v20 }
  0xdd   : > { %1068 = vst [vmem:[%s2315_s25 + $0xd0] sm:$0xf] %v1852_v20  ;;  %1069 = vst [vmem:[%s2315_s25 + $0xd4] sm:$0xf] %v1852_v20 }
  0xde   : > { %1070 = vst [vmem:[%s2315_s25 + $0xd8] sm:$0xf] %v1852_v20  ;;  %1071 = vst [vmem:[%s2315_s25 + $0xdc] sm:$0xf] %v1852_v20 }
  0xdf   : > { %1072 = vst [vmem:[%s2315_s25 + $0xe0] sm:$0xf] %v1852_v20  ;;  %1073 = vst [vmem:[%s2315_s25 + $0xe4] sm:$0xf] %v1852_v20 }
  0xe0   : > { %1074 = vst [vmem:[%s2315_s25 + $0xe8] sm:$0xf] %v1852_v20  ;;  %1075 = vst [vmem:[%s2315_s25 + $0xec] sm:$0xf] %v1852_v20 }
  0xe1   : > { %1076 = vst [vmem:[%s2315_s25 + $0xf0] sm:$0xf] %v1852_v20  ;;  %1077 = vst [vmem:[%s2315_s25 + $0xf4] sm:$0xf] %v1852_v20 }
  0xe2   : > { %1078 = vst [vmem:[%s2315_s25 + $0xf8] sm:$0xf] %v1852_v20  ;;  %1079 = vst [vmem:[%s2315_s25 + $0xfc] sm:$0xf] %v1852_v20  ;;  %v516_v20 = vmul.f32 %v2452_v8, %v2452_v8 }
  0xe4   : > { %v604_v12 = vsel %vm183_vm0, %v516_v20, 0.0  ;;  %v243_v20 = vpop.xlane.xlu1 %242 }
  0xe5   : > { %605 = vadd.xlane.f32.xlu0 %v604_v12  ;;  %v394_v12 = vmul.f32 0.125, %v240_v30  ;;  %v395_v0 = vmul.f32 0.125, %v243_v20 }
  0xe7   : > { %v2489_v15 = vsub.f32 %v2011_v36, %v394_v12  ;;  %v2492_v33 = vsub.f32 %v2014_v37, %v395_v0  ;;  %v252_v0 = vpop.xlane.xlu0 %251 }
  0xe8   : > { %v249_v16 = vpop.xlane.xlu1 %248 }
  0xe9   : > { %611 = vadd.xlane.f32.xlu0 %v610_v22  ;;  %v396_v22 = vmul.f32 0.125, %v246_v38  ;;  %v397_v30 = vmul.f32 0.125, %v249_v16  ;;  %v522_v20 = vmul.f32 %v2489_v15, %v2489_v15  ;;  %v523_v36 = vmul.f32 %v2492_v33, %v2492_v33 }
  0xeb   : > { %v2501_v12 = vsub.f32 %v2021_v40, %v396_v22  ;;  %v2504_v37 = vsub.f32 %v2024_v41, %v397_v30  ;;  %v622_v24 = vsel %vm183_vm0, %v522_v20, 0.0  ;;  %v625_v32 = vsel %vm183_vm0, %v523_v36, 0.0  ;;  %v258_v30 = vpop.xlane.xlu0 %257 }
  0xec   : > { %v255_v1 = vpop.xlane.xlu1 %254  ;;  %626 = vadd.xlane.f32.xlu1 %v625_v32 }
  0xed   : > { %617 = vadd.xlane.f32.xlu0 %v616_v39  ;;  %v398_v39 = vmul.f32 0.125, %v252_v0  ;;  %v399_v38 = vmul.f32 0.125, %v255_v1  ;;  %v524_v16 = vmul.f32 %v2501_v12, %v2501_v12  ;;  %v525_v40 = vmul.f32 %v2504_v37, %v2504_v37 }
  0xef   : > { %v2513_v22 = vsub.f32 %v2031_v44, %v398_v39  ;;  %v2516_v41 = vsub.f32 %v2034_v45, %v399_v38  ;;  %v628_v28 = vsel %vm183_vm0, %v524_v16, 0.0  ;;  %v631_v36 = vsel %vm183_vm0, %v525_v40, 0.0  ;;  %v264_v38 = vpop.xlane.xlu0 %263 }
  0xf0   : > { %v261_v20 = vpop.xlane.xlu1 %260  ;;  %632 = vadd.xlane.f32.xlu1 %v631_v36 }
  0xf1   : > { %623 = vadd.xlane.f32.xlu0 %v622_v24  ;;  %v400_v24 = vmul.f32 0.125, %v258_v30  ;;  %v401_v0 = vmul.f32 0.125, %v261_v20  ;;  %v526_v1 = vmul.f32 %v2513_v22, %v2513_v22  ;;  %v527_v44 = vmul.f32 %v2516_v41, %v2516_v41 }
  0xf3   : > { %v2525_v39 = vsub.f32 %v2041_v48, %v400_v24  ;;  %v2528_v45 = vsub.f32 %v2044_v49, %v401_v0  ;;  %v634_v32 = vsel %vm183_vm0, %v526_v1, 0.0  ;;  %v637_v40 = vsel %vm183_vm0, %v527_v44, 0.0  ;;  %v270_v0 = vpop.xlane.xlu0 %269 }
  0xf4   : > { %v267_v16 = vpop.xlane.xlu1 %266  ;;  %638 = vadd.xlane.f32.xlu1 %v637_v40 }
  0xf5   : > { %629 = vadd.xlane.f32.xlu0 %v628_v28  ;;  %v402_v28 = vmul.f32 0.125, %v264_v38  ;;  %v403_v30 = vmul.f32 0.125, %v267_v16  ;;  %v528_v20 = vmul.f32 %v2525_v39, %v2525_v39  ;;  %v529_v48 = vmul.f32 %v2528_v45, %v2528_v45 }
  0xf7   : > { %v2537_v24 = vsub.f32 %v2051_v52, %v402_v28  ;;  %v2540_v49 = vsub.f32 %v2054_v53, %v403_v30  ;;  %v640_v36 = vsel %vm183_vm0, %v528_v20, 0.0  ;;  %v643_v44 = vsel %vm183_vm0, %v529_v48, 0.0  ;;  %v276_v30 = vpop.xlane.xlu0 %275 }
  0xf8   : > { %v273_v1 = vpop.xlane.xlu1 %272  ;;  %644 = vadd.xlane.f32.xlu1 %v643_v44 }
  0xf9   : > { %635 = vadd.xlane.f32.xlu0 %v634_v32  ;;  %v404_v32 = vmul.f32 0.125, %v270_v0  ;;  %v405_v38 = vmul.f32 0.125, %v273_v1  ;;  %v530_v16 = vmul.f32 %v2537_v24, %v2537_v24  ;;  %v531_v52 = vmul.f32 %v2540_v49, %v2540_v49 }
  0xfb   : > { %v2549_v28 = vsub.f32 %v2061_v56, %v404_v32  ;;  %v2552_v53 = vsub.f32 %v2064_v57, %v405_v38  ;;  %v646_v40 = vsel %vm183_vm0, %v530_v16, 0.0  ;;  %v649_v48 = vsel %vm183_vm0, %v531_v52, 0.0  ;;  %v282_v38 = vpop.xlane.xlu0 %281 }
  0xfc   : > { %v279_v20 = vpop.xlane.xlu1 %278  ;;  %650 = vadd.xlane.f32.xlu1 %v649_v48 }
  0xfd   : > { %641 = vadd.xlane.f32.xlu0 %v640_v36  ;;  %v406_v36 = vmul.f32 0.125, %v276_v30  ;;  %v407_v0 = vmul.f32 0.125, %v279_v20  ;;  %v532_v1 = vmul.f32 %v2549_v28, %v2549_v28  ;;  %v533_v56 = vmul.f32 %v2552_v53, %v2552_v53 }
  0xff   : > { %v2561_v32 = vsub.f32 %v2071_v60, %v406_v36  ;;  %v2564_v57 = vsub.f32 %v2074_v61, %v407_v0  ;;  %v652_v44 = vsel %vm183_vm0, %v532_v1, 0.0  ;;  %v655_v52 = vsel %vm183_vm0, %v533_v56, 0.0  ;;  %v288_v0 = vpop.xlane.xlu0 %287 }
 0x100   : > { %v285_v16 = vpop.xlane.xlu1 %284  ;;  %656 = vadd.xlane.f32.xlu1 %v655_v52 }
 0x101   : > { %647 = vadd.xlane.f32.xlu0 %v646_v40  ;;  %v408_v40 = vmul.f32 0.125, %v282_v38  ;;  %v409_v30 = vmul.f32 0.125, %v285_v16  ;;  %v534_v20 = vmul.f32 %v2561_v32, %v2561_v32  ;;  %v535_v60 = vmul.f32 %v2564_v57, %v2564_v57 }
 0x103   : > { %v2573_v36 = vsub.f32 %v2081_v3, %v408_v40  ;;  %v2576_v61 = vsub.f32 %v2084_v4, %v409_v30  ;;  %v658_v48 = vsel %vm183_vm0, %v534_v20, 0.0  ;;  %v661_v56 = vsel %vm183_vm0, %v535_v60, 0.0  ;;  %v294_v30 = vpop.xlane.xlu0 %293 }
 0x104   : > { %v291_v1 = vpop.xlane.xlu1 %290  ;;  %662 = vadd.xlane.f32.xlu1 %v661_v56 }
 0x105   : > { %653 = vadd.xlane.f32.xlu0 %v652_v44  ;;  %v410_v44 = vmul.f32 0.125, %v288_v0  ;;  %v411_v38 = vmul.f32 0.125, %v291_v1  ;;  %v536_v16 = vmul.f32 %v2573_v36, %v2573_v36  ;;  %v537_v3 = vmul.f32 %v2576_v61, %v2576_v61 }
 0x107   : > { %v2585_v40 = vsub.f32 %v2091_v10, %v410_v44  ;;  %v2588_v4 = vsub.f32 %v2094_v11, %v411_v38  ;;  %v664_v52 = vsel %vm183_vm0, %v536_v16, 0.0  ;;  %v667_v60 = vsel %vm183_vm0, %v537_v3, 0.0  ;;  %v300_v38 = vpop.xlane.xlu0 %299 }
 0x108   : > { %v297_v20 = vpop.xlane.xlu1 %296  ;;  %668 = vadd.xlane.f32.xlu1 %v667_v60 }
 0x109   : > { %659 = vadd.xlane.f32.xlu0 %v658_v48  ;;  %v412_v48 = vmul.f32 0.125, %v294_v30  ;;  %v413_v0 = vmul.f32 0.125, %v297_v20  ;;  %v538_v1 = vmul.f32 %v2585_v40, %v2585_v40  ;;  %v539_v10 = vmul.f32 %v2588_v4, %v2588_v4 }
 0x10b   : > { %v2597_v44 = vsub.f32 %v2101_v18, %v412_v48  ;;  %v2600_v11 = vsub.f32 %v2104_v19, %v413_v0  ;;  %v670_v56 = vsel %vm183_vm0, %v538_v1, 0.0  ;;  %v673_v3 = vsel %vm183_vm0, %v539_v10, 0.0  ;;  %v306_v0 = vpop.xlane.xlu0 %305 }
 0x10c   : > { %v303_v16 = vpop.xlane.xlu1 %302  ;;  %674 = vadd.xlane.f32.xlu1 %v673_v3 }
 0x10d   : > { %665 = vadd.xlane.f32.xlu0 %v664_v52  ;;  %v414_v52 = vmul.f32 0.125, %v300_v38  ;;  %v415_v30 = vmul.f32 0.125, %v303_v16  ;;  %v540_v20 = vmul.f32 %v2597_v44, %v2597_v44  ;;  %v541_v18 = vmul.f32 %v2600_v11, %v2600_v11 }
 0x10f   : > { %v2609_v48 = vsub.f32 %v2111_v26, %v414_v52  ;;  %v2612_v19 = vsub.f32 %v2114_v27, %v415_v30  ;;  %v676_v60 = vsel %vm183_vm0, %v540_v20, 0.0  ;;  %v679_v10 = vsel %vm183_vm0, %v541_v18, 0.0  ;;  %v312_v30 = vpop.xlane.xlu0 %311 }
 0x110   : > { %v309_v1 = vpop.xlane.xlu1 %308  ;;  %680 = vadd.xlane.f32.xlu1 %v679_v10 }
 0x111   : > { %671 = vadd.xlane.f32.xlu0 %v670_v56  ;;  %v416_v56 = vmul.f32 0.125, %v306_v0  ;;  %v417_v38 = vmul.f32 0.125, %v309_v1  ;;  %v542_v16 = vmul.f32 %v2609_v48, %v2609_v48  ;;  %v543_v26 = vmul.f32 %v2612_v19, %v2612_v19 }
 0x113   : > { %v2621_v52 = vsub.f32 %v2121_v34, %v416_v56  ;;  %v2624_v27 = vsub.f32 %v2124_v35, %v417_v38  ;;  %v682_v3 = vsel %vm183_vm0, %v542_v16, 0.0  ;;  %v685_v18 = vsel %vm183_vm0, %v543_v26, 0.0  ;;  %v318_v38 = vpop.xlane.xlu0 %317 }
 0x114   : > { %v315_v20 = vpop.xlane.xlu1 %314  ;;  %686 = vadd.xlane.f32.xlu1 %v685_v18 }
 0x115   : > { %677 = vadd.xlane.f32.xlu0 %v676_v60  ;;  %v418_v60 = vmul.f32 0.125, %v312_v30  ;;  %v419_v0 = vmul.f32 0.125, %v315_v20  ;;  %v544_v1 = vmul.f32 %v2621_v52, %v2621_v52  ;;  %v545_v34 = vmul.f32 %v2624_v27, %v2624_v27 }
 0x117   : > { %v2633_v56 = vsub.f32 %v2131_v42, %v418_v60  ;;  %v2636_v35 = vsub.f32 %v2134_v43, %v419_v0  ;;  %v688_v10 = vsel %vm183_vm0, %v544_v1, 0.0  ;;  %v691_v26 = vsel %vm183_vm0, %v545_v34, 0.0  ;;  %v324_v0 = vpop.xlane.xlu0 %323 }
 0x118   : > { %v321_v16 = vpop.xlane.xlu1 %320  ;;  %692 = vadd.xlane.f32.xlu1 %v691_v26 }
 0x119   : > { %683 = vadd.xlane.f32.xlu0 %v682_v3  ;;  %v420_v3 = vmul.f32 0.125, %v318_v38  ;;  %v421_v30 = vmul.f32 0.125, %v321_v16  ;;  %v546_v20 = vmul.f32 %v2633_v56, %v2633_v56  ;;  %v547_v42 = vmul.f32 %v2636_v35, %v2636_v35 }
 0x11b   : > { %v2645_v60 = vsub.f32 %v2141_v50, %v420_v3  ;;  %v2648_v43 = vsub.f32 %v2144_v51, %v421_v30  ;;  %v694_v18 = vsel %vm183_vm0, %v546_v20, 0.0  ;;  %v697_v34 = vsel %vm183_vm0, %v547_v42, 0.0  ;;  %v330_v30 = vpop.xlane.xlu0 %329 }
 0x11c   : > { %v327_v1 = vpop.xlane.xlu1 %326  ;;  %698 = vadd.xlane.f32.xlu1 %v697_v34 }
 0x11d   : > { %689 = vadd.xlane.f32.xlu0 %v688_v10  ;;  %v422_v10 = vmul.f32 0.125, %v324_v0  ;;  %v423_v38 = vmul.f32 0.125, %v327_v1  ;;  %v548_v16 = vmul.f32 %v2645_v60, %v2645_v60  ;;  %v549_v50 = vmul.f32 %v2648_v43, %v2648_v43 }
 0x11f   : > { %v2657_v3 = vsub.f32 %v2151_v58, %v422_v10  ;;  %v2660_v51 = vsub.f32 %v2154_v59, %v423_v38  ;;  %v700_v26 = vsel %vm183_vm0, %v548_v16, 0.0  ;;  %v703_v42 = vsel %vm183_vm0, %v549_v50, 0.0  ;;  %v336_v38 = vpop.xlane.xlu0 %335 }
 0x120   : > { %v333_v20 = vpop.xlane.xlu1 %332  ;;  %704 = vadd.xlane.f32.xlu1 %v703_v42 }
 0x121   : > { %695 = vadd.xlane.f32.xlu0 %v694_v18  ;;  %3059 = vst [vmem:[#allocation19_spill] sm:$0xff] %v2660_v51  ;;  %v424_v18 = vmul.f32 0.125, %v330_v30  ;;  %v425_v0 = vmul.f32 0.125, %v333_v20  ;;  %v550_v1 = vmul.f32 %v2657_v3, %v2657_v3  ;;  %v551_v58 = vmul.f32 %v2660_v51, %v2660_v51 }
 0x123   : > { %v2669_v10 = vsub.f32 %v2161_v6, %v424_v18  ;;  %v2672_v59 = vsub.f32 %v2164_v7, %v425_v0  ;;  %v706_v34 = vsel %vm183_vm0, %v550_v1, 0.0  ;;  %v709_v50 = vsel %vm183_vm0, %v551_v58, 0.0  ;;  %v3062_v18 = vld [vmem:[#allocation5_spill] sm:$0xff]  ;;  %v3064_v7 = vld [vmem:[#allocation6_spill] sm:$0xff]  ;;  %v342_v1 = vpop.xlane.xlu0 %341 }
 0x124   : > { %v339_v16 = vpop.xlane.xlu1 %338  ;;  %710 = vadd.xlane.f32.xlu1 %v709_v50 }
 0x125   : > { %701 = vadd.xlane.f32.xlu0 %v700_v26  ;;  %3060 = vst [vmem:[#allocation20_spill] sm:$0xff] %v2669_v10  ;;  %3061 = vst [vmem:[#allocation21_spill] sm:$0xff] %v2672_v59  ;;  %v426_v26 = vmul.f32 0.125, %v336_v38  ;;  %v427_v30 = vmul.f32 0.125, %v339_v16  ;;  %v552_v20 = vmul.f32 %v2669_v10, %v2669_v10  ;;  %v553_v6 = vmul.f32 %v2672_v59, %v2672_v59 }
 0x126   : > { %v428_v38 = vmul.f32 0.125, %v342_v1 }
 0x127   : > { %v2681_v51 = vsub.f32 %v3062_v18, %v426_v26  ;;  %v2684_v0 = vsub.f32 %v3064_v7, %v427_v30  ;;  %v712_v42 = vsel %vm183_vm0, %v552_v20, 0.0  ;;  %v3066_v18 = vld [vmem:[#allocation7_spill] sm:$0xff]  ;;  %v3068_v30 = vld [vmem:[#allocation8_spill] sm:$0xff]  ;;  %v348_v20 = vpop.xlane.xlu0 %347 }
 0x128   : > { %v345_v58 = vpop.xlane.xlu1 %344  ;;  %v2693_v59 = vsub.f32 %v3066_v18, %v428_v38  ;;  %v430_v1 = vmul.f32 0.125, %v348_v20  ;;  %v3070_v18 = vld [vmem:[#allocation9_spill] sm:$0xff] }
 0x129   : > { %707 = vadd.xlane.f32.xlu0 %v706_v34  ;;  %3063 = vst [vmem:[#allocation5_spill] sm:$0xff] %v2681_v51  ;;  %3065 = vst [vmem:[#allocation6_spill] sm:$0xff] %v2684_v0  ;;  %v715_v34 = vsel %vm183_vm0, %v553_v6, 0.0  ;;  %v429_v16 = vmul.f32 0.125, %v345_v58  ;;  %v554_v10 = vmul.f32 %v2681_v51, %v2681_v51  ;;  %v555_v26 = vmul.f32 %v2684_v0, %v2684_v0 }
 0x12a   : > { %3067 = vst [vmem:[#allocation7_spill] sm:$0xff] %v2693_v59  ;;  %716 = vadd.xlane.f32.xlu1 %v715_v34  ;;  %v556_v51 = vmul.f32 %v2693_v59, %v2693_v59  ;;  %v2705_v0 = vsub.f32 %v3070_v18, %v430_v1  ;;  %v3074_v18 = vld [vmem:[#allocation11_spill] sm:$0xff] }
 0x12b   : > { %v2696_v7 = vsub.f32 %v3068_v30, %v429_v16  ;;  %v718_v50 = vsel %vm183_vm0, %v554_v10, 0.0  ;;  %v3072_v16 = vld [vmem:[#allocation10_spill] sm:$0xff]  ;;  %v354_v34 = vpop.xlane.xlu0 %353 }
 0x12c   : > { %v351_v6 = vpop.xlane.xlu1 %350  ;;  %3071 = vst [vmem:[#allocation9_spill] sm:$0xff] %v2705_v0  ;;  %v724_v10 = vsel %vm183_vm0, %v556_v51, 0.0  ;;  %v432_v20 = vmul.f32 0.125, %v354_v34  ;;  %v558_v59 = vmul.f32 %v2705_v0, %v2705_v0 }
 0x12d   : > { %713 = vadd.xlane.f32.xlu0 %v712_v42  ;;  %3069 = vst [vmem:[#allocation8_spill] sm:$0xff] %v2696_v7  ;;  %v721_v42 = vsel %vm183_vm0, %v555_v26, 0.0  ;;  %v431_v58 = vmul.f32 0.125, %v351_v6  ;;  %v557_v38 = vmul.f32 %v2696_v7, %v2696_v7 }
 0x12e   : > { %722 = vadd.xlane.f32.xlu1 %v721_v42  ;;  %v2717_v7 = vsub.f32 %v3074_v18, %v432_v20  ;;  %v730_v51 = vsel %vm183_vm0, %v558_v59, 0.0  ;;  %v3078_v18 = vld [vmem:[#allocation13_spill] sm:$0xff] }
 0x12f   : > { %v2708_v30 = vsub.f32 %v3072_v16, %v431_v58  ;;  %v3076_v58 = vld [vmem:[#allocation12_spill] sm:$0xff]  ;;  %v360_v42 = vpop.xlane.xlu0 %359 }
 0x130   : > { %v357_v26 = vpop.xlane.xlu1 %356  ;;  %3075 = vst [vmem:[#allocation11_spill] sm:$0xff] %v2717_v7  ;;  %v434_v34 = vmul.f32 0.125, %v360_v42  ;;  %v560_v0 = vmul.f32 %v2717_v7, %v2717_v7 }
 0x131   : > { %719 = vadd.xlane.f32.xlu0 %v718_v50  ;;  %3073 = vst [vmem:[#allocation10_spill] sm:$0xff] %v2708_v30  ;;  %v727_v50 = vsel %vm183_vm0, %v557_v38, 0.0  ;;  %v433_v6 = vmul.f32 0.125, %v357_v26  ;;  %v559_v1 = vmul.f32 %v2708_v30, %v2708_v30 }
 0x132   : > { %728 = vadd.xlane.f32.xlu1 %v727_v50  ;;  %v2729_v30 = vsub.f32 %v3078_v18, %v434_v34  ;;  %v736_v59 = vsel %vm183_vm0, %v560_v0, 0.0  ;;  %v3082_v18 = vld [vmem:[#allocation15_spill] sm:$0xff] }
 0x133   : > { %v2720_v16 = vsub.f32 %v3076_v58, %v433_v6  ;;  %v3080_v6 = vld [vmem:[#allocation14_spill] sm:$0xff]  ;;  %v366_v50 = vpop.xlane.xlu0 %365 }
 0x134   : > { %v363_v38 = vpop.xlane.xlu1 %362  ;;  %3079 = vst [vmem:[#allocation13_spill] sm:$0xff] %v2729_v30  ;;  %v436_v42 = vmul.f32 0.125, %v366_v50  ;;  %v562_v7 = vmul.f32 %v2729_v30, %v2729_v30 }
 0x135   : > { %725 = vadd.xlane.f32.xlu0 %v724_v10  ;;  %3077 = vst [vmem:[#allocation12_spill] sm:$0xff] %v2720_v16  ;;  %v733_v10 = vsel %vm183_vm0, %v559_v1, 0.0  ;;  %v435_v26 = vmul.f32 0.125, %v363_v38  ;;  %v561_v20 = vmul.f32 %v2720_v16, %v2720_v16 }
 0x136   : > { %734 = vadd.xlane.f32.xlu1 %v733_v10  ;;  %v2741_v16 = vsub.f32 %v3082_v18, %v436_v42  ;;  %v742_v0 = vsel %vm183_vm0, %v562_v7, 0.0  ;;  %v3086_v18 = vld [vmem:[#allocation17_spill] sm:$0xff] }
 0x137   : > { %v2732_v58 = vsub.f32 %v3080_v6, %v435_v26  ;;  %v3084_v26 = vld [vmem:[#allocation16_spill] sm:$0xff]  ;;  %v372_v10 = vpop.xlane.xlu0 %371 }
 0x138   : > { %v369_v1 = vpop.xlane.xlu1 %368  ;;  %3083 = vst [vmem:[#allocation15_spill] sm:$0xff] %v2741_v16  ;;  %v438_v50 = vmul.f32 0.125, %v372_v10  ;;  %v564_v30 = vmul.f32 %v2741_v16, %v2741_v16 }
 0x139   : > { %731 = vadd.xlane.f32.xlu0 %v730_v51  ;;  %3081 = vst [vmem:[#allocation14_spill] sm:$0xff] %v2732_v58  ;;  %v739_v51 = vsel %vm183_vm0, %v561_v20, 0.0  ;;  %v437_v38 = vmul.f32 0.125, %v369_v1  ;;  %v563_v34 = vmul.f32 %v2732_v58, %v2732_v58 }
 0x13a   : > { %740 = vadd.xlane.f32.xlu1 %v739_v51  ;;  %v2753_v58 = vsub.f32 %v3086_v18, %v438_v50  ;;  %v748_v7 = vsel %vm183_vm0, %v564_v30, 0.0 }
 0x13b   : > { %v2744_v6 = vsub.f32 %v3084_v26, %v437_v38 }
 0x13c   : > { %v375_v20 = vpop.xlane.xlu1 %374  ;;  %3087 = vst [vmem:[#allocation17_spill] sm:$0xff] %v2753_v58 }
 0x13d   : > { %737 = vadd.xlane.f32.xlu0 %v736_v59  ;;  %3085 = vst [vmem:[#allocation16_spill] sm:$0xff] %v2744_v6  ;;  %v745_v59 = vsel %vm183_vm0, %v563_v34, 0.0  ;;  %v439_v1 = vmul.f32 0.125, %v375_v20  ;;  %v565_v42 = vmul.f32 %v2744_v6, %v2744_v6  ;;  %v566_v34 = vmul.f32 %v2753_v58, %v2753_v58 }
 0x13e   : > { %746 = vadd.xlane.f32.xlu1 %v745_v59 }
 0x13f   : > { %v2756_v38 = vsub.f32 %v2234_v31, %v439_v1  ;;  %v751_v51 = vsel %vm183_vm0, %v565_v42, 0.0  ;;  %v570_v31 = vpop.xlane.xlu0 %569 }
 0x140   : > { %v760_v20 = vmul.f32 0.125, %v570_v31 }
 0x141   : > { %743 = vadd.xlane.f32.xlu0 %v742_v0  ;;  %3088 = vst [vmem:[#allocation22_spill] sm:$0xff] %v2756_v38  ;;  %v567_v26 = vmul.f32 %v2756_v38, %v2756_v38  ;;  %v754_v0 = vsel %vm183_vm0, %v566_v34, 0.0 }
 0x142   : > { %752 = vadd.xlane.f32.xlu1 %v751_v51  ;;  %v824_v30 = vadd.f32 1e-05, %v760_v20 }
 0x143   : > { %v757_v10 = vsel %vm183_vm0, %v567_v26, 0.0  ;;  %v573_v59 = vpop.xlane.xlu1 %572  ;;  %v576_v50 = vpop.xlane.xlu0 %575 }
 0x144   : > { %1660 = vrsqrt.f32 %v824_v30  ;;  %v761_v1 = vmul.f32 0.125, %v573_v59  ;;  %v762_v42 = vmul.f32 0.125, %v576_v50 }
 0x145   : > { %749 = vadd.xlane.f32.xlu0 %v748_v7 }
 0x146   : > { %758 = vadd.xlane.f32.xlu1 %v757_v10  ;;  %v825_v18 = vadd.f32 1e-05, %v761_v1  ;;  %v826_v7 = vadd.f32 1e-05, %v762_v42 }
 0x147   : > { %v579_v58 = vpop.xlane.xlu1 %578  ;;  %v582_v6 = vpop.xlane.xlu0 %581 }
 0x148   : > { %1662 = vrsqrt.f32 %v825_v18  ;;  %v763_v38 = vmul.f32 0.125, %v579_v58  ;;  %v764_v34 = vmul.f32 0.125, %v582_v6 }
 0x149   : > { %755 = vadd.xlane.f32.xlu0 %v754_v0  ;;  %1664 = vrsqrt.f32 %v826_v7 }
 0x14a   : > { %v827_v51 = vadd.f32 1e-05, %v763_v38  ;;  %v828_v0 = vadd.f32 1e-05, %v764_v34 }
 0x14b   : > { %v585_v26 = vpop.xlane.xlu1 %584  ;;  %v588_v10 = vpop.xlane.xlu0 %587 }
 0x14c   : > { %1666 = vrsqrt.f32 %v827_v51  ;;  %v765_v31 = vmul.f32 0.125, %v585_v26  ;;  %v766_v20 = vmul.f32 0.125, %v588_v10 }
 0x14d   : > { %1668 = vrsqrt.f32 %v828_v0 }
 0x14e   : > { %v1661_v16 = vpop.eup %1660  ;;  %v829_v30 = vadd.f32 1e-05, %v765_v31  ;;  %v830_v59 = vadd.f32 1e-05, %v766_v20 }
 0x14f   : > { %v952_v50 = vmul.f32 %v1661_v16, %v2241_v54  ;;  %v591_v1 = vpop.xlane.xlu1 %590  ;;  %v594_v42 = vpop.xlane.xlu0 %593  ;;  %v3089_v54 = vld [vmem:[#allocation18_spill] sm:$0xff] }
 0x150   : > { %1670 = vrsqrt.f32 %v829_v30  ;;  %v767_v58 = vmul.f32 0.125, %v591_v1  ;;  %v768_v6 = vmul.f32 0.125, %v594_v42 }
 0x151   : > { %v1553_v38 = vpack.c.bf16 %v952_v50, %v952_v50  ;;  %1672 = vrsqrt.f32 %v830_v59 }
 0x152   : > { %v1663_v18 = vpop.eup %1662  ;;  %v831_v7 = vadd.f32 1e-05, %v767_v58  ;;  %v832_v34 = vadd.f32 1e-05, %v768_v6 }
 0x153   : > { %v1665_v51 = vpop.eup %1664  ;;  %1337 = vst.msk [vmem:[%s2315_s25] sm:$0xf] %vm1336_vm1, %v1553_v38  ;;  %v953_v0 = vmul.f32 %v1663_v18, %v2251_v47  ;;  %v597_v26 = vpop.xlane.xlu1 %596 }
 0x154   : > { %v600_v10 = vpop.xlane.xlu0 %599  ;;  %v954_v16 = vmul.f32 %v1665_v51, %v3089_v54  ;;  %1674 = vrsqrt.f32 %v831_v7  ;;  %v769_v31 = vmul.f32 0.125, %v597_v26 }
 0x155   : > { %v770_v20 = vmul.f32 0.125, %v600_v10  ;;  %v1554_v30 = vpack.c.bf16 %v953_v0, %v953_v0  ;;  %1676 = vrsqrt.f32 %v832_v34 }
 0x156   : > { %v1667_v59 = vpop.eup %1666  ;;  %v1555_v50 = vpack.c.bf16 %v954_v16, %v954_v16  ;;  %v833_v1 = vadd.f32 1e-05, %v769_v31 }
 0x157   : > { %v834_v42 = vadd.f32 1e-05, %v770_v20  ;;  %v1669_v58 = vpop.eup %1668  ;;  %1338 = vst.msk [vmem:[%s2315_s25 + $0x4] sm:$0xf] %vm1336_vm1, %v1554_v30  ;;  %v955_v47 = vmul.f32 %v1667_v59, %v2254_v55  ;;  %v603_v6 = vpop.xlane.xlu1 %602 }
 0x158   : > { %1339 = vst.msk [vmem:[%s2315_s25 + $0x8] sm:$0xf] %vm1336_vm1, %v1555_v50  ;;  %v956_v18 = vmul.f32 %v1669_v58, %v2263_v2  ;;  %1678 = vrsqrt.f32 %v833_v1  ;;  %v771_v7 = vmul.f32 0.125, %v603_v6 }
 0x159   : > { %v1556_v51 = vpack.c.bf16 %v955_v47, %v955_v47  ;;  %1680 = vrsqrt.f32 %v834_v42 }
 0x15a   : > { %v1671_v0 = vpop.eup %1670  ;;  %v1557_v26 = vpack.c.bf16 %v956_v18, %v956_v18  ;;  %v835_v10 = vadd.f32 1e-05, %v771_v7 }
 0x15b   : > { %v1673_v16 = vpop.eup %1672  ;;  %1340 = vst.msk [vmem:[%s2315_s25 + $0xc] sm:$0xf] %vm1336_vm1, %v1556_v51  ;;  %v957_v55 = vmul.f32 %v1671_v0, %v2266_v5  ;;  %v609_v31 = vpop.xlane.xlu1 %608 }
 0x15c   : > { %1341 = vst.msk [vmem:[%s2315_s25 + $0x10] sm:$0xf] %vm1336_vm1, %v1557_v26  ;;  %v958_v2 = vmul.f32 %v1673_v16, %v2275_v62  ;;  %1682 = vrsqrt.f32 %v835_v10  ;;  %v773_v30 = vmul.f32 0.125, %v609_v31 }
 0x15d   : > { %v1558_v50 = vpack.c.bf16 %v957_v55, %v957_v55 }
 0x15e   : > { %v1675_v1 = vpop.eup %1674  ;;  %v1559_v42 = vpack.c.bf16 %v958_v2, %v958_v2  ;;  %v837_v58 = vadd.f32 1e-05, %v773_v30 }
 0x15f   : > { %v1677_v6 = vpop.eup %1676  ;;  %1342 = vst.msk [vmem:[%s2315_s25 + $0x14] sm:$0xf] %vm1336_vm1, %v1558_v50  ;;  %v959_v5 = vmul.f32 %v1675_v1, %v2278_v9 }
 0x160   : > { %1343 = vst.msk [vmem:[%s2315_s25 + $0x18] sm:$0xf] %vm1336_vm1, %v1559_v42  ;;  %v960_v62 = vmul.f32 %v1677_v6, %v2287_v13 }
 0x161   : > { %v1560_v51 = vpack.c.bf16 %v959_v5, %v959_v5 }
 0x162   : > { %v1679_v0 = vpop.eup %1678  ;;  %v1561_v26 = vpack.c.bf16 %v960_v62, %v960_v62 }
 0x163   : > { %v1681_v16 = vpop.eup %1680  ;;  %1344 = vst.msk [vmem:[%s2315_s25 + $0x1c] sm:$0xf] %vm1336_vm1, %v1560_v51  ;;  %v961_v9 = vmul.f32 %v1679_v0, %v2290_v46 }
 0x164   : > { %1345 = vst.msk [vmem:[%s2315_s25 + $0x20] sm:$0xf] %vm1336_vm1, %v1561_v26  ;;  %v962_v13 = vmul.f32 %v1681_v16, %v2302_v17 }
 0x165   : > { %v1562_v30 = vpack.c.bf16 %v961_v9, %v961_v9 }
 0x166   : > { %v1563_v50 = vpack.c.bf16 %v962_v13, %v962_v13 }
 0x167   : > { %1346 = vst.msk [vmem:[%s2315_s25 + $0x24] sm:$0xf] %vm1336_vm1, %v1562_v30 }
 0x168   : > { %1347 = vst.msk [vmem:[%s2315_s25 + $0x28] sm:$0xf] %vm1336_vm1, %v1563_v50 }
 0x172   : > { %v606_v38 = vpop.xlane.xlu0 %605 }
 0x173   : > { %v772_v34 = vmul.f32 0.125, %v606_v38  ;;  %v615_v38 = vpop.xlane.xlu1 %614 }
 0x174   : > { %v775_v7 = vmul.f32 0.125, %v615_v38 }
 0x175   : > { %v836_v54 = vadd.f32 1e-05, %v772_v34 }
 0x176   : > { %v612_v20 = vpop.xlane.xlu0 %611  ;;  %v839_v10 = vadd.f32 1e-05, %v775_v7 }
 0x177   : > { %v774_v59 = vmul.f32 0.125, %v612_v20  ;;  %1684 = vrsqrt.f32 %v836_v54  ;;  %v621_v55 = vpop.xlane.xlu1 %620 }
 0x178   : > { %1686 = vrsqrt.f32 %v837_v58  ;;  %v777_v20 = vmul.f32 0.125, %v621_v55 }
 0x179   : > { %v838_v47 = vadd.f32 1e-05, %v774_v59  ;;  %v1683_v59 = vpop.eup %1682 }
 0x17a   : > { %v618_v18 = vpop.xlane.xlu0 %617  ;;  %v841_v1 = vadd.f32 1e-05, %v777_v20  ;;  %v963_v46 = vmul.f32 %v1683_v59, %v2305_v14 }
 0x17b   : > { %v776_v34 = vmul.f32 0.125, %v618_v18  ;;  %1688 = vrsqrt.f32 %v838_v47  ;;  %v627_v47 = vpop.xlane.xlu1 %626 }
 0x17c   : > { %1690 = vrsqrt.f32 %v839_v10  ;;  %v779_v5 = vmul.f32 0.125, %v627_v47  ;;  %v1564_v18 = vpack.c.bf16 %v963_v46, %v963_v46 }
 0x17d   : > { %v840_v54 = vadd.f32 1e-05, %v776_v34 }
 0x17e   : > { %v624_v31 = vpop.xlane.xlu0 %623  ;;  %v843_v34 = vadd.f32 1e-05, %v779_v5  ;;  %1348 = vst.msk [vmem:[%s2315_s25 + $0x2c] sm:$0xf] %vm1336_vm1, %v1564_v18 }
 0x17f   : > { %v778_v2 = vmul.f32 0.125, %v624_v31  ;;  %1692 = vrsqrt.f32 %v840_v54  ;;  %v633_v26 = vpop.xlane.xlu1 %632 }
 0x180   : > { %1694 = vrsqrt.f32 %v841_v1  ;;  %v781_v54 = vmul.f32 0.125, %v633_v26 }
 0x181   : > { %v842_v42 = vadd.f32 1e-05, %v778_v2  ;;  %v1685_v58 = vpop.eup %1684 }
 0x182   : > { %v630_v6 = vpop.xlane.xlu0 %629  ;;  %v964_v17 = vmul.f32 %v1685_v58, %v2452_v8  ;;  %v1687_v62 = vpop.eup %1686  ;;  %v845_v13 = vadd.f32 1e-05, %v781_v54 }
 0x183   : > { %v780_v38 = vmul.f32 0.125, %v630_v6  ;;  %1696 = vrsqrt.f32 %v842_v42  ;;  %v965_v14 = vmul.f32 %v1687_v62, %v2455_v63  ;;  %v639_v30 = vpop.xlane.xlu1 %638 }
 0x184   : > { %v1565_v7 = vpack.c.bf16 %v964_v17, %v964_v17  ;;  %1698 = vrsqrt.f32 %v843_v34  ;;  %v783_v50 = vmul.f32 0.125, %v639_v30 }
 0x185   : > { %v844_v51 = vadd.f32 1e-05, %v780_v38  ;;  %v1689_v0 = vpop.eup %1688  ;;  %v1566_v9 = vpack.c.bf16 %v965_v14, %v965_v14 }
 0x186   : > { %v636_v10 = vpop.xlane.xlu0 %635  ;;  %1349 = vst.msk [vmem:[%s2315_s25 + $0x30] sm:$0xf] %vm1336_vm1, %v1565_v7  ;;  %v966_v8 = vmul.f32 %v1689_v0, %v2465_v25  ;;  %v1691_v55 = vpop.eup %1690  ;;  %v847_v47 = vadd.f32 1e-05, %v783_v50 }
 0x187   : > { %v782_v16 = vmul.f32 0.125, %v636_v10  ;;  %1700 = vrsqrt.f32 %v844_v51  ;;  %1350 = vst.msk [vmem:[%s2315_s25 + $0x34] sm:$0xf] %vm1336_vm1, %v1566_v9  ;;  %v967_v63 = vmul.f32 %v1691_v55, %v2468_v21  ;;  %v645_v5 = vpop.xlane.xlu1 %644 }
 0x188   : > { %v1567_v31 = vpack.c.bf16 %v966_v8, %v966_v8  ;;  %1702 = vrsqrt.f32 %v845_v13  ;;  %v785_v18 = vmul.f32 0.125, %v645_v5 }
 0x189   : > { %v846_v20 = vadd.f32 1e-05, %v782_v16  ;;  %v1693_v2 = vpop.eup %1692  ;;  %v1568_v42 = vpack.c.bf16 %v967_v63, %v967_v63 }
 0x18a   : > { %v642_v59 = vpop.xlane.xlu0 %641  ;;  %1351 = vst.msk [vmem:[%s2315_s25 + $0x38] sm:$0xf] %vm1336_vm1, %v1567_v31  ;;  %v968_v25 = vmul.f32 %v1693_v2, %v2477_v23  ;;  %v1695_v58 = vpop.eup %1694  ;;  %v849_v0 = vadd.f32 1e-05, %v785_v18 }
 0x18b   : > { %v784_v1 = vmul.f32 0.125, %v642_v59  ;;  %1704 = vrsqrt.f32 %v846_v20  ;;  %1352 = vst.msk [vmem:[%s2315_s25 + $0x3c] sm:$0xf] %vm1336_vm1, %v1568_v42  ;;  %v969_v21 = vmul.f32 %v1695_v58, %v2480_v29  ;;  %v651_v10 = vpop.xlane.xlu1 %650 }
 0x18c   : > { %v1569_v46 = vpack.c.bf16 %v968_v25, %v968_v25  ;;  %1706 = vrsqrt.f32 %v847_v47  ;;  %v787_v54 = vmul.f32 0.125, %v651_v10 }
 0x18d   : > { %v848_v6 = vadd.f32 1e-05, %v784_v1  ;;  %v1697_v17 = vpop.eup %1696  ;;  %v1570_v7 = vpack.c.bf16 %v969_v21, %v969_v21 }
 0x18e   : > { %v648_v38 = vpop.xlane.xlu0 %647  ;;  %1353 = vst.msk [vmem:[%s2315_s25 + $0x40] sm:$0xf] %vm1336_vm1, %v1569_v46  ;;  %v970_v23 = vmul.f32 %v1697_v17, %v2489_v15  ;;  %v1699_v34 = vpop.eup %1698  ;;  %v851_v13 = vadd.f32 1e-05, %v787_v54 }
 0x18f   : > { %v786_v62 = vmul.f32 0.125, %v648_v38  ;;  %1708 = vrsqrt.f32 %v848_v6  ;;  %1354 = vst.msk [vmem:[%s2315_s25 + $0x44] sm:$0xf] %vm1336_vm1, %v1570_v7  ;;  %v971_v29 = vmul.f32 %v1699_v34, %v2492_v33  ;;  %v657_v63 = vpop.xlane.xlu1 %656 }
 0x190   : > { %v1571_v51 = vpack.c.bf16 %v970_v23, %v970_v23  ;;  %1710 = vrsqrt.f32 %v849_v0  ;;  %v789_v59 = vmul.f32 0.125, %v657_v63 }
 0x191   : > { %v850_v14 = vadd.f32 1e-05, %v786_v62  ;;  %v1701_v26 = vpop.eup %1700  ;;  %v1572_v9 = vpack.c.bf16 %v971_v29, %v971_v29 }
 0x192   : > { %v654_v8 = vpop.xlane.xlu0 %653  ;;  %1355 = vst.msk [vmem:[%s2315_s25 + $0x48] sm:$0xf] %vm1336_vm1, %v1571_v51  ;;  %v972_v15 = vmul.f32 %v1701_v26, %v2501_v12  ;;  %v1703_v55 = vpop.eup %1702  ;;  %v853_v58 = vadd.f32 1e-05, %v789_v59 }
 0x193   : > { %v788_v16 = vmul.f32 0.125, %v654_v8  ;;  %1712 = vrsqrt.f32 %v850_v14  ;;  %1356 = vst.msk [vmem:[%s2315_s25 + $0x4c] sm:$0xf] %vm1336_vm1, %v1572_v9  ;;  %v973_v33 = vmul.f32 %v1703_v55, %v2504_v37  ;;  %v663_v6 = vpop.xlane.xlu1 %662 }
 0x194   : > { %v1573_v31 = vpack.c.bf16 %v972_v15, %v972_v15  ;;  %1714 = vrsqrt.f32 %v851_v13  ;;  %v791_v21 = vmul.f32 0.125, %v663_v6 }
 0x195   : > { %v852_v20 = vadd.f32 1e-05, %v788_v16  ;;  %v1705_v2 = vpop.eup %1704  ;;  %v1574_v50 = vpack.c.bf16 %v973_v33, %v973_v33 }
 0x196   : > { %v660_v30 = vpop.xlane.xlu0 %659  ;;  %1357 = vst.msk [vmem:[%s2315_s25 + $0x50] sm:$0xf] %vm1336_vm1, %v1573_v31  ;;  %v974_v12 = vmul.f32 %v1705_v2, %v2513_v22  ;;  %v1707_v1 = vpop.eup %1706  ;;  %v855_v62 = vadd.f32 1e-05, %v791_v21 }
 0x197   : > { %v790_v25 = vmul.f32 0.125, %v660_v30  ;;  %1716 = vrsqrt.f32 %v852_v20  ;;  %1358 = vst.msk [vmem:[%s2315_s25 + $0x54] sm:$0xf] %vm1336_vm1, %v1574_v50  ;;  %v975_v37 = vmul.f32 %v1707_v1, %v2516_v41  ;;  %v669_v51 = vpop.xlane.xlu1 %668 }
 0x198   : > { %v1575_v42 = vpack.c.bf16 %v974_v12, %v974_v12  ;;  %1718 = vrsqrt.f32 %v853_v58  ;;  %v793_v14 = vmul.f32 0.125, %v669_v51 }
 0x199   : > { %v854_v46 = vadd.f32 1e-05, %v790_v25  ;;  %v1709_v47 = vpop.eup %1708  ;;  %v1576_v38 = vpack.c.bf16 %v975_v37, %v975_v37 }
 0x19a   : > { %v666_v17 = vpop.xlane.xlu0 %665  ;;  %1359 = vst.msk [vmem:[%s2315_s25 + $0x58] sm:$0xf] %vm1336_vm1, %v1575_v42  ;;  %v976_v22 = vmul.f32 %v1709_v47, %v2525_v39  ;;  %v1711_v23 = vpop.eup %1710  ;;  %v857_v15 = vadd.f32 1e-05, %v793_v14 }
 0x19b   : > { %v792_v5 = vmul.f32 0.125, %v666_v17  ;;  %1720 = vrsqrt.f32 %v854_v46  ;;  %1360 = vst.msk [vmem:[%s2315_s25 + $0x5c] sm:$0xf] %vm1336_vm1, %v1576_v38  ;;  %v977_v41 = vmul.f32 %v1711_v23, %v2528_v45  ;;  %v675_v9 = vpop.xlane.xlu1 %674 }
 0x19c   : > { %v1577_v18 = vpack.c.bf16 %v976_v22, %v976_v22  ;;  %1722 = vrsqrt.f32 %v855_v62  ;;  %v795_v31 = vmul.f32 0.125, %v675_v9 }
 0x19d   : > { %v856_v7 = vadd.f32 1e-05, %v792_v5  ;;  %v1713_v34 = vpop.eup %1712  ;;  %v1578_v29 = vpack.c.bf16 %v977_v41, %v977_v41 }
 0x19e   : > { %v672_v0 = vpop.xlane.xlu0 %671  ;;  %1361 = vst.msk [vmem:[%s2315_s25 + $0x60] sm:$0xf] %vm1336_vm1, %v1577_v18  ;;  %v978_v39 = vmul.f32 %v1713_v34, %v2537_v24  ;;  %v1715_v10 = vpop.eup %1714  ;;  %v859_v63 = vadd.f32 1e-05, %v795_v31 }
 0x19f   : > { %v794_v26 = vmul.f32 0.125, %v672_v0  ;;  %1724 = vrsqrt.f32 %v856_v7  ;;  %1362 = vst.msk [vmem:[%s2315_s25 + $0x64] sm:$0xf] %vm1336_vm1, %v1578_v29  ;;  %v979_v45 = vmul.f32 %v1715_v10, %v2540_v49  ;;  %v681_v59 = vpop.xlane.xlu1 %680 }
 0x1a0   : > { %v1579_v8 = vpack.c.bf16 %v978_v39, %v978_v39  ;;  %1726 = vrsqrt.f32 %v857_v15  ;;  %v797_v50 = vmul.f32 0.125, %v681_v59 }
 0x1a1   : > { %v858_v54 = vadd.f32 1e-05, %v794_v26  ;;  %v1717_v16 = vpop.eup %1716  ;;  %v1580_v20 = vpack.c.bf16 %v979_v45, %v979_v45 }
 0x1a2   : > { %v678_v55 = vpop.xlane.xlu0 %677  ;;  %1363 = vst.msk [vmem:[%s2315_s25 + $0x68] sm:$0xf] %vm1336_vm1, %v1579_v8  ;;  %v980_v24 = vmul.f32 %v1717_v16, %v2549_v28  ;;  %v1719_v2 = vpop.eup %1718  ;;  %v861_v47 = vadd.f32 1e-05, %v797_v50 }
 0x1a3   : > { %v796_v13 = vmul.f32 0.125, %v678_v55  ;;  %1728 = vrsqrt.f32 %v858_v54  ;;  %1364 = vst.msk [vmem:[%s2315_s25 + $0x6c] sm:$0xf] %vm1336_vm1, %v1580_v20  ;;  %v981_v49 = vmul.f32 %v1719_v2, %v2552_v53  ;;  %v687_v17 = vpop.xlane.xlu1 %686 }
 0x1a4   : > { %v1581_v33 = vpack.c.bf16 %v980_v24, %v980_v24  ;;  %1730 = vrsqrt.f32 %v859_v63  ;;  %v799_v21 = vmul.f32 0.125, %v687_v17 }
 0x1a5   : > { %v860_v30 = vadd.f32 1e-05, %v796_v13  ;;  %v1721_v12 = vpop.eup %1720  ;;  %v1582_v42 = vpack.c.bf16 %v981_v49, %v981_v49 }
 0x1a6   : > { %v684_v25 = vpop.xlane.xlu0 %683  ;;  %1365 = vst.msk [vmem:[%s2315_s25 + $0x70] sm:$0xf] %vm1336_vm1, %v1581_v33  ;;  %v982_v28 = vmul.f32 %v1721_v12, %v2561_v32  ;;  %v1723_v58 = vpop.eup %1722  ;;  %v863_v62 = vadd.f32 1e-05, %v799_v21 }
 0x1a7   : > { %v798_v1 = vmul.f32 0.125, %v684_v25  ;;  %1732 = vrsqrt.f32 %v860_v30  ;;  %1366 = vst.msk [vmem:[%s2315_s25 + $0x74] sm:$0xf] %vm1336_vm1, %v1582_v42  ;;  %v983_v53 = vmul.f32 %v1723_v58, %v2564_v57  ;;  %v693_v41 = vpop.xlane.xlu1 %692 }
 0x1a8   : > { %v1583_v46 = vpack.c.bf16 %v982_v28, %v982_v28  ;;  %1734 = vrsqrt.f32 %v861_v47  ;;  %v801_v0 = vmul.f32 0.125, %v693_v41 }
 0x1a9   : > { %v862_v37 = vadd.f32 1e-05, %v798_v1  ;;  %v1725_v6 = vpop.eup %1724  ;;  %v1584_v38 = vpack.c.bf16 %v983_v53, %v983_v53 }
 0x1aa   : > { %v690_v22 = vpop.xlane.xlu0 %689  ;;  %1367 = vst.msk [vmem:[%s2315_s25 + $0x78] sm:$0xf] %vm1336_vm1, %v1583_v46  ;;  %v984_v32 = vmul.f32 %v1725_v6, %v2573_v36  ;;  %v1727_v23 = vpop.eup %1726  ;;  %v865_v10 = vadd.f32 1e-05, %v801_v0 }
 0x1ab   : > { %v800_v5 = vmul.f32 0.125, %v690_v22  ;;  %1736 = vrsqrt.f32 %v862_v37  ;;  %1368 = vst.msk [vmem:[%s2315_s25 + $0x7c] sm:$0xf] %vm1336_vm1, %v1584_v38  ;;  %v985_v57 = vmul.f32 %v1727_v23, %v2576_v61  ;;  %v699_v54 = vpop.xlane.xlu1 %698 }
 0x1ac   : > { %v1585_v18 = vpack.c.bf16 %v984_v32, %v984_v32  ;;  %1738 = vrsqrt.f32 %v863_v62  ;;  %v803_v45 = vmul.f32 0.125, %v699_v54 }
 0x1ad   : > { %v864_v7 = vadd.f32 1e-05, %v800_v5  ;;  %v1729_v34 = vpop.eup %1728  ;;  %v1586_v14 = vpack.c.bf16 %v985_v57, %v985_v57 }
 0x1ae   : > { %v696_v51 = vpop.xlane.xlu0 %695  ;;  %1369 = vst.msk [vmem:[%s2315_s25 + $0x80] sm:$0xf] %vm1336_vm1, %v1585_v18  ;;  %v986_v36 = vmul.f32 %v1729_v34, %v2585_v40  ;;  %v1731_v26 = vpop.eup %1730  ;;  %v867_v13 = vadd.f32 1e-05, %v803_v45 }
 0x1af   : > { %v802_v39 = vmul.f32 0.125, %v696_v51  ;;  %1740 = vrsqrt.f32 %v864_v7  ;;  %1370 = vst.msk [vmem:[%s2315_s25 + $0x84] sm:$0xf] %vm1336_vm1, %v1586_v14  ;;  %v987_v61 = vmul.f32 %v1731_v26, %v2588_v4  ;;  %v705_v33 = vpop.xlane.xlu1 %704 }
 0x1b0   : > { %v1587_v29 = vpack.c.bf16 %v986_v36, %v986_v36  ;;  %1742 = vrsqrt.f32 %v865_v10  ;;  %v805_v30 = vmul.f32 0.125, %v705_v33 }
 0x1b1   : > { %v866_v8 = vadd.f32 1e-05, %v802_v39  ;;  %v1733_v15 = vpop.eup %1732  ;;  %v1588_v55 = vpack.c.bf16 %v987_v61, %v987_v61 }
 0x1b2   : > { %v702_v16 = vpop.xlane.xlu0 %701  ;;  %1371 = vst.msk [vmem:[%s2315_s25 + $0x88] sm:$0xf] %vm1336_vm1, %v1587_v29  ;;  %v988_v40 = vmul.f32 %v1733_v15, %v2597_v44  ;;  %v1735_v24 = vpop.eup %1734  ;;  %v869_v28 = vadd.f32 1e-05, %v805_v30 }
 0x1b3   : > { %v804_v9 = vmul.f32 0.125, %v702_v16  ;;  %1744 = vrsqrt.f32 %v866_v8  ;;  %1372 = vst.msk [vmem:[%s2315_s25 + $0x8c] sm:$0xf] %vm1336_vm1, %v1588_v55  ;;  %v989_v4 = vmul.f32 %v1735_v24, %v2600_v11  ;;  %v711_v42 = vpop.xlane.xlu1 %710 }
 0x1b4   : > { %v1589_v31 = vpack.c.bf16 %v988_v40, %v988_v40  ;;  %1746 = vrsqrt.f32 %v867_v13  ;;  %v807_v46 = vmul.f32 0.125, %v711_v42 }
 0x1b5   : > { %v868_v20 = vadd.f32 1e-05, %v804_v9  ;;  %v1737_v2 = vpop.eup %1736  ;;  %v1590_v49 = vpack.c.bf16 %v989_v4, %v989_v4 }
 0x1b6   : > { %v708_v63 = vpop.xlane.xlu0 %707  ;;  %1373 = vst.msk [vmem:[%s2315_s25 + $0x90] sm:$0xf] %vm1336_vm1, %v1589_v31  ;;  %v990_v44 = vmul.f32 %v1737_v2, %v2609_v48  ;;  %v1739_v59 = vpop.eup %1738  ;;  %v871_v17 = vadd.f32 1e-05, %v807_v46 }
 0x1b7   : > { %v806_v12 = vmul.f32 0.125, %v708_v63  ;;  %1748 = vrsqrt.f32 %v868_v20  ;;  %1374 = vst.msk [vmem:[%s2315_s25 + $0x94] sm:$0xf] %vm1336_vm1, %v1590_v49  ;;  %v991_v11 = vmul.f32 %v1739_v59, %v2612_v19  ;;  %v717_v21 = vpop.xlane.xlu1 %716 }
 0x1b8   : > { %v1591_v25 = vpack.c.bf16 %v990_v44, %v990_v44  ;;  %1750 = vrsqrt.f32 %v869_v28  ;;  %v809_v38 = vmul.f32 0.125, %v717_v21 }
 0x1b9   : > { %v870_v50 = vadd.f32 1e-05, %v806_v12  ;;  %v1741_v1 = vpop.eup %1740  ;;  %v1592_v37 = vpack.c.bf16 %v991_v11, %v991_v11 }
 0x1ba   : > { %v714_v58 = vpop.xlane.xlu0 %713  ;;  %1375 = vst.msk [vmem:[%s2315_s25 + $0x98] sm:$0xf] %vm1336_vm1, %v1591_v25  ;;  %v992_v48 = vmul.f32 %v1741_v1, %v2621_v52  ;;  %v1743_v6 = vpop.eup %1742  ;;  %v873_v34 = vadd.f32 1e-05, %v809_v38  ;;  %v3095_v38 = vld [vmem:[#allocation7_spill] sm:$0xff] }
 0x1bb   : > { %v808_v47 = vmul.f32 0.125, %v714_v58  ;;  %1752 = vrsqrt.f32 %v870_v50  ;;  %1376 = vst.msk [vmem:[%s2315_s25 + $0x9c] sm:$0xf] %vm1336_vm1, %v1592_v37  ;;  %v993_v19 = vmul.f32 %v1743_v6, %v2624_v27  ;;  %v723_v51 = vpop.xlane.xlu1 %722  ;;  %v3092_v50 = vld [vmem:[#allocation21_spill] sm:$0xff] }
 0x1bc   : > { %v1593_v53 = vpack.c.bf16 %v992_v48, %v992_v48  ;;  %1754 = vrsqrt.f32 %v871_v17  ;;  %v811_v0 = vmul.f32 0.125, %v723_v51  ;;  %v3093_v58 = vld [vmem:[#allocation5_spill] sm:$0xff] }
 0x1bd   : > { %v872_v22 = vadd.f32 1e-05, %v808_v47  ;;  %v1745_v32 = vpop.eup %1744  ;;  %v1594_v18 = vpack.c.bf16 %v993_v19, %v993_v19  ;;  %v3094_v19 = vld [vmem:[#allocation6_spill] sm:$0xff] }
 0x1be   : > { %v720_v5 = vpop.xlane.xlu0 %719  ;;  %1377 = vst.msk [vmem:[%s2315_s25 + $0xa0] sm:$0xf] %vm1336_vm1, %v1593_v53  ;;  %v994_v52 = vmul.f32 %v1745_v32, %v2633_v56  ;;  %v1747_v62 = vpop.eup %1746  ;;  %v875_v10 = vadd.f32 1e-05, %v811_v0 }
 0x1bf   : > { %v810_v23 = vmul.f32 0.125, %v720_v5  ;;  %1756 = vrsqrt.f32 %v872_v22  ;;  %1378 = vst.msk [vmem:[%s2315_s25 + $0xa4] sm:$0xf] %vm1336_vm1, %v1594_v18  ;;  %v995_v27 = vmul.f32 %v1747_v62, %v2636_v35  ;;  %v729_v61 = vpop.xlane.xlu1 %728 }
 0x1c0   : > { %v1595_v7 = vpack.c.bf16 %v994_v52, %v994_v52  ;;  %1758 = vrsqrt.f32 %v873_v34  ;;  %v813_v16 = vmul.f32 0.125, %v729_v61 }
 0x1c1   : > { %v874_v57 = vadd.f32 1e-05, %v810_v23  ;;  %v1749_v41 = vpop.eup %1748  ;;  %v1596_v14 = vpack.c.bf16 %v995_v27, %v995_v27 }
 0x1c2   : > { %v726_v36 = vpop.xlane.xlu0 %725  ;;  %1379 = vst.msk [vmem:[%s2315_s25 + $0xa8] sm:$0xf] %vm1336_vm1, %v1595_v7  ;;  %v996_v56 = vmul.f32 %v1749_v41, %v2645_v60  ;;  %v1751_v26 = vpop.eup %1750  ;;  %v877_v24 = vadd.f32 1e-05, %v813_v16  ;;  %v3098_v16 = vld [vmem:[#allocation10_spill] sm:$0xff] }
 0x1c3   : > { %v812_v39 = vmul.f32 0.125, %v726_v36  ;;  %1760 = vrsqrt.f32 %v874_v57  ;;  %1380 = vst.msk [vmem:[%s2315_s25 + $0xac] sm:$0xf] %vm1336_vm1, %v1596_v14  ;;  %v997_v35 = vmul.f32 %v1751_v26, %v2648_v43  ;;  %v3090_v43 = vld [vmem:[#allocation19_spill] sm:$0xff]  ;;  %v735_v2 = vpop.xlane.xlu1 %734  ;;  %v3096_v36 = vld [vmem:[#allocation8_spill] sm:$0xff]  ;;  %v3097_v14 = vld [vmem:[#allocation9_spill] sm:$0xff] }
 0x1c4   : > { %v1597_v29 = vpack.c.bf16 %v996_v56, %v996_v56  ;;  %1762 = vrsqrt.f32 %v875_v10  ;;  %v815_v63 = vmul.f32 0.125, %v735_v2 }
 0x1c5   : > { %v876_v8 = vadd.f32 1e-05, %v812_v39  ;;  %v1753_v15 = vpop.eup %1752  ;;  %v1598_v45 = vpack.c.bf16 %v997_v35, %v997_v35 }
 0x1c6   : > { %v732_v54 = vpop.xlane.xlu0 %731  ;;  %1381 = vst.msk [vmem:[%s2315_s25 + $0xb0] sm:$0xf] %vm1336_vm1, %v1597_v29  ;;  %v998_v60 = vmul.f32 %v1753_v15, %v2657_v3  ;;  %v1755_v9 = vpop.eup %1754  ;;  %v3091_v3 = vld [vmem:[#allocation20_spill] sm:$0xff]  ;;  %v879_v59 = vadd.f32 1e-05, %v815_v63 }
 0x1c7   : > { %v814_v40 = vmul.f32 0.125, %v732_v54  ;;  %1764 = vrsqrt.f32 %v876_v8  ;;  %1382 = vst.msk [vmem:[%s2315_s25 + $0xb4] sm:$0xf] %vm1336_vm1, %v1598_v45  ;;  %v999_v20 = vmul.f32 %v1755_v9, %v3090_v43  ;;  %v741_v11 = vpop.xlane.xlu1 %740  ;;  %v3099_v9 = vld [vmem:[#allocation11_spill] sm:$0xff] }
 0x1c8   : > { %v1599_v55 = vpack.c.bf16 %v998_v60, %v998_v60  ;;  %1766 = vrsqrt.f32 %v877_v24  ;;  %v817_v46 = vmul.f32 0.125, %v741_v11 }
 0x1c9   : > { %v878_v31 = vadd.f32 1e-05, %v814_v40  ;;  %v1757_v13 = vpop.eup %1756  ;;  %v1600_v30 = vpack.c.bf16 %v999_v20, %v999_v20 }
 0x1ca   : > { %v738_v4 = vpop.xlane.xlu0 %737  ;;  %1383 = vst.msk [vmem:[%s2315_s25 + $0xb8] sm:$0xf] %vm1336_vm1, %v1599_v55  ;;  %v1000_v33 = vmul.f32 %v1757_v13, %v3091_v3  ;;  %v1759_v12 = vpop.eup %1758  ;;  %v881_v17 = vadd.f32 1e-05, %v817_v46 }
 0x1cb   : > { %v816_v44 = vmul.f32 0.125, %v738_v4  ;;  %1768 = vrsqrt.f32 %v878_v31  ;;  %1384 = vst.msk [vmem:[%s2315_s25 + $0xbc] sm:$0xf] %vm1336_vm1, %v1600_v30  ;;  %v1001_v1 = vmul.f32 %v1759_v12, %v3092_v50  ;;  %v747_v5 = vpop.xlane.xlu1 %746  ;;  %v3100_v4 = vld [vmem:[#allocation12_spill] sm:$0xff] }
 0x1cc   : > { %v1601_v49 = vpack.c.bf16 %v1000_v33, %v1000_v33  ;;  %1770 = vrsqrt.f32 %v879_v59  ;;  %v819_v18 = vmul.f32 0.125, %v747_v5  ;;  %v3101_v33 = vld [vmem:[#allocation13_spill] sm:$0xff]  ;;  %v3102_v59 = vld [vmem:[#allocation14_spill] sm:$0xff] }
 0x1cd   : > { %v880_v25 = vadd.f32 1e-05, %v816_v44  ;;  %v1761_v28 = vpop.eup %1760  ;;  %v1602_v37 = vpack.c.bf16 %v1001_v1, %v1001_v1 }
 0x1ce   : > { %v744_v42 = vpop.xlane.xlu0 %743  ;;  %1385 = vst.msk [vmem:[%s2315_s25 + $0xc0] sm:$0xf] %vm1336_vm1, %v1601_v49  ;;  %v1002_v48 = vmul.f32 %v1761_v28, %v3093_v58  ;;  %v1763_v6 = vpop.eup %1762  ;;  %v883_v41 = vadd.f32 1e-05, %v819_v18  ;;  %v3103_v28 = vld [vmem:[#allocation15_spill] sm:$0xff] }
 0x1cf   : > { %v818_v47 = vmul.f32 0.125, %v744_v42  ;;  %1772 = vrsqrt.f32 %v880_v25  ;;  %1386 = vst.msk [vmem:[%s2315_s25 + $0xc4] sm:$0xf] %vm1336_vm1, %v1602_v37  ;;  %v1003_v21 = vmul.f32 %v1763_v6, %v3094_v19  ;;  %v753_v0 = vpop.xlane.xlu1 %752 }
 0x1d0   : > { %v1603_v53 = vpack.c.bf16 %v1002_v48, %v1002_v48  ;;  %1774 = vrsqrt.f32 %v881_v17  ;;  %v821_v29 = vmul.f32 0.125, %v753_v0  ;;  %v3104_v48 = vld [vmem:[#allocation16_spill] sm:$0xff] }
 0x1d1   : > { %v882_v22 = vadd.f32 1e-05, %v818_v47  ;;  %v1765_v32 = vpop.eup %1764  ;;  %v1604_v7 = vpack.c.bf16 %v1003_v21, %v1003_v21  ;;  %v3105_v47 = vld [vmem:[#allocation17_spill] sm:$0xff] }
 0x1d2   : > { %v750_v52 = vpop.xlane.xlu0 %749  ;;  %1387 = vst.msk [vmem:[%s2315_s25 + $0xc8] sm:$0xf] %vm1336_vm1, %v1603_v53  ;;  %v1004_v23 = vmul.f32 %v1765_v32, %v3095_v38  ;;  %v1767_v34 = vpop.eup %1766  ;;  %v885_v61 = vadd.f32 1e-05, %v821_v29 }
 0x1d3   : > { %v820_v62 = vmul.f32 0.125, %v750_v52  ;;  %1776 = vrsqrt.f32 %v882_v22  ;;  %1388 = vst.msk [vmem:[%s2315_s25 + $0xcc] sm:$0xf] %vm1336_vm1, %v1604_v7  ;;  %v1005_v56 = vmul.f32 %v1767_v34, %v3096_v36  ;;  %v759_v45 = vpop.xlane.xlu1 %758  ;;  %v3106_v22 = vld [vmem:[#allocation22_spill] sm:$0xff] }
 0x1d4   : > { %v1605_v57 = vpack.c.bf16 %v1004_v23, %v1004_v23  ;;  %1778 = vrsqrt.f32 %v883_v41  ;;  %v823_v24 = vmul.f32 0.125, %v759_v45 }
 0x1d5   : > { %v884_v27 = vadd.f32 1e-05, %v820_v62  ;;  %v1769_v51 = vpop.eup %1768  ;;  %v1606_v8 = vpack.c.bf16 %v1005_v56, %v1005_v56 }
 0x1d6   : > { %v756_v39 = vpop.xlane.xlu0 %755  ;;  %1389 = vst.msk [vmem:[%s2315_s25 + $0xd0] sm:$0xf] %vm1336_vm1, %v1605_v57  ;;  %v1006_v26 = vmul.f32 %v1769_v51, %v3097_v14  ;;  %v1771_v15 = vpop.eup %1770  ;;  %v887_v20 = vadd.f32 1e-05, %v823_v24 }
 0x1d7   : > { %v822_v10 = vmul.f32 0.125, %v756_v39  ;;  %1780 = vrsqrt.f32 %v884_v27  ;;  %1390 = vst.msk [vmem:[%s2315_s25 + $0xd4] sm:$0xf] %vm1336_vm1, %v1606_v8  ;;  %v1007_v40 = vmul.f32 %v1771_v15, %v3098_v16 }
 0x1d8   : > { %v1607_v35 = vpack.c.bf16 %v1006_v26, %v1006_v26  ;;  %1782 = vrsqrt.f32 %v885_v61 }
 0x1d9   : > { %v886_v54 = vadd.f32 1e-05, %v822_v10  ;;  %v1773_v60 = vpop.eup %1772  ;;  %v1608_v31 = vpack.c.bf16 %v1007_v40, %v1007_v40 }
 0x1da   : > { %1391 = vst.msk [vmem:[%s2315_s25 + $0xd8] sm:$0xf] %vm1336_vm1, %v1607_v35  ;;  %v1008_v55 = vmul.f32 %v1773_v60, %v3099_v9  ;;  %v1775_v13 = vpop.eup %1774 }
 0x1db   : > { %1784 = vrsqrt.f32 %v886_v54  ;;  %1392 = vst.msk [vmem:[%s2315_s25 + $0xdc] sm:$0xf] %vm1336_vm1, %v1608_v31  ;;  %v1009_v3 = vmul.f32 %v1775_v13, %v3100_v4 }
 0x1dc   : > { %v1609_v43 = vpack.c.bf16 %v1008_v55, %v1008_v55  ;;  %1786 = vrsqrt.f32 %v887_v20 }
 0x1dd   : > { %v1777_v2 = vpop.eup %1776  ;;  %v1610_v44 = vpack.c.bf16 %v1009_v3, %v1009_v3 }
 0x1de   : > { %1393 = vst.msk [vmem:[%s2315_s25 + $0xe0] sm:$0xf] %vm1336_vm1, %v1609_v43  ;;  %v1010_v63 = vmul.f32 %v1777_v2, %v3101_v33  ;;  %v1779_v30 = vpop.eup %1778 }
 0x1df   : > { %1394 = vst.msk [vmem:[%s2315_s25 + $0xe4] sm:$0xf] %vm1336_vm1, %v1610_v44  ;;  %v1011_v25 = vmul.f32 %v1779_v30, %v3102_v59 }
 0x1e0   : > { %v1611_v12 = vpack.c.bf16 %v1010_v63, %v1010_v63 }
 0x1e1   : > { %v1781_v49 = vpop.eup %1780  ;;  %v1612_v1 = vpack.c.bf16 %v1011_v25, %v1011_v25 }
 0x1e2   : > { %1395 = vst.msk [vmem:[%s2315_s25 + $0xe8] sm:$0xf] %vm1336_vm1, %v1611_v12  ;;  %v1012_v50 = vmul.f32 %v1781_v49, %v3103_v28  ;;  %v1783_v11 = vpop.eup %1782 }
 0x1e3   : > { %1396 = vst.msk [vmem:[%s2315_s25 + $0xec] sm:$0xf] %vm1336_vm1, %v1612_v1  ;;  %v1013_v46 = vmul.f32 %v1783_v11, %v3104_v48 }
 0x1e4   : > { %v1613_v42 = vpack.c.bf16 %v1012_v50, %v1012_v50 }
 0x1e5   : > { %v1785_v58 = vpop.eup %1784  ;;  %v1614_v6 = vpack.c.bf16 %v1013_v46, %v1013_v46 }
 0x1e6   : > { %1397 = vst.msk [vmem:[%s2315_s25 + $0xf0] sm:$0xf] %vm1336_vm1, %v1613_v42  ;;  %v1014_v37 = vmul.f32 %v1785_v58, %v3105_v47  ;;  %v1787_v53 = vpop.eup %1786 }
 0x1e7   : > { %1398 = vst.msk [vmem:[%s2315_s25 + $0xf4] sm:$0xf] %vm1336_vm1, %v1614_v6  ;;  %v1015_v32 = vmul.f32 %v1787_v53, %v3106_v22 }
 0x1e8   : > { %v1615_v17 = vpack.c.bf16 %v1014_v37, %v1014_v37 }
 0x1e9   : > { %v1616_v19 = vpack.c.bf16 %v1015_v32, %v1015_v32 }
 0x1ea   : > { %1399 = vst.msk [vmem:[%s2315_s25 + $0xf8] sm:$0xf] %vm1336_vm1, %v1615_v17 }
 0x1eb   : > { %1400 = vst.msk [vmem:[%s2315_s25 + $0xfc] sm:$0xf] %vm1336_vm1, %v1616_v19 }
 0x1ec   : > { %1801 = shalt.err (!%p1798_p3)
}
 0x1ed   : > { %s1802_s11 = scalar_lea.hbm %s2961_s30, 4096  ;;  %s1806_s18 = scalar_lea.hbm %s3011_s1, 8192 }
 0x1ee   : > { %p1803_p4 = scmp.ne.s32.totalorder %s2961_s30, %s1802_s11  ;;  %p1807_p9 = scmp.lt.u32.totalorder %s2961_s30, %s3011_s1 }
 0x1ef   : > { %p1808_p10 = scmp.lt.u32.totalorder %s1806_s18, %s1802_s11  ;;  %p1810_p12 = scmp.lt.u32.totalorder %s1802_s11, %s2961_s30 }
 0x1f0   : > { %p1804_p7 = pnand %p1803_p4, %p1904_p5 }
 0x1f1   : > { %p1809_p11 = por %p1808_p10, %p1807_p9 }
 0x1f2   : > { %p1805_p8 = pneg %p1804_p7 }
 0x1f3   : > { %p1811_p13 = por %p1810_p12, %p1809_p11 }
 0x1f5   : > { %p1812_p0 = pnand %p1811_p13, %p1805_p8 }
 0x1f7   : > { %1815 = shalt.err (!%p1812_p0)
}
 0x1f8   : > { %s1854_s21 = smov 64   ;;  %s1855_s22 = smov 4  }
 0x1f9   : > { %1618 = dma.vmem_to_hbm [thread:$0]  (%p1904_p5), %s2963_s27, 4096, %s2961_s30, %s2969_s2, %s1854_s21, %s1854_s21, %s1855_s22  }
 0x1fa PF: > { %p1624_p1 = scmp.ge.s32.totalorder %s1850_s9, 2  ;;  %s1430_s23 = sand.u32 1, %s1838_s6  }
 0x1fb   : > { %s1431_s24 = scalar_lea.sflag [#allocation3], %s1430_s23 }
 0x1fc   : > { %p1621_p2 = pnand %p1624_p1, %p1908_p6 }
 0x1fe   : > { %1833 = dma.done.wait (!%p1621_p2), %s1431_s24, 4096  }
 0x1ff   : > { %1835 = vsyncadd (!%p1621_p2), %s1431_s24, 4294963200  ;;  %p11_p3 = scmp.ge.s32.totalorder %s1891_s12, 4   ;;  %s3107_s6 = smov %s1842_s7 }
 0x200   : > { %s3108_s7 = smov %s1846_s8  ;;  %s3109_s8 = smov %s1902_s15 }
 0x201   : > { %s3110_s9 = smov %s1891_s12  ;;  %13 = sbr.rel (!%p11_p3) target bundleno = 3 (0x3), region = 59 }
 0x208   :  { %1436 = vsyncpa [#allocation3], 1 }
 0x209   :  { %1438 = vsyncpa [#allocation3 + $0x1], 1 }

</bundles_post_ra>
